<compile_context>
chip_gen: v6e
topology: v6e:2x2x1
jax: 0.10.0
libtpu: 0.0.40
codegen_flags: <defaults>
</compile_context>

<pallas_src>
import functools
import math

import jax
import jax.numpy as jnp
from jax import lax
from jax.experimental import pallas as pl
from jax.experimental.pallas import tpu as pltpu


def _conv_meta_kernel(*refs, kh_size, kw_size, dilation, stride, tile_hout,
                      blk_h, w_out, c_in, has_halo):
    """One (batch, output-H tile) grid step: per-tap MXU accumulation.

    refs (has_halo=True):  x_ref, halo_ref, w_ref, b_ref, o_ref, acc_ref
    refs (has_halo=False): x_ref,           w_ref, b_ref, o_ref, acc_ref

    x_ref    : (1, blk_h, Wp, Cin)            main input rows of this tile
    halo_ref : (1, halo_blk, Wp, Cin)         first rows of the next H block
    w_ref    : (KH*KW, Cin, Cout_pad)         packed weights (resident)
    b_ref    : (1, Cout_pad)                  bias, float32 (resident)
    o_ref    : (1, tile_hout, Wout, Cout_pad) lane-dense output block
    acc_ref  : (tile_hout*Wout, Cout_pad)     f32 VMEM accumulator scratch
    """
    if has_halo:
        x_ref, halo_ref, w_ref, b_ref, o_ref, acc_ref = refs
    else:
        x_ref, w_ref, b_ref, o_ref, acc_ref = refs
        halo_ref = None

    def _ds(start, size):
        # Static, aligned (strided) window straight from the ref.
        return pl.ds(start, size) if stride == 1 else pl.ds(start, size, stride)

    for kh in range(kh_size):
        h0 = kh * dilation
        # Output rows whose input row lies inside the main block (static).
        if h0 < blk_h:
            n_main = min(tile_hout, (blk_h - 1 - h0) // stride + 1)
        else:
            n_main = 0
        n_halo = tile_hout - n_main

        for kw in range(kw_size):
            w0 = kw * dilation
            w_tap = w_ref[kh * kw_size + kw]              # (Cin, Cout_pad)
            first = (kh == 0) and (kw == 0)
            if first:
                # kh == 0 always covers every output row from the main block,
                # so the first tap fully initializes the accumulator.
                assert n_main == tile_hout and n_halo == 0

            if n_main > 0:
                tap = x_ref[0, _ds(h0, n_main), _ds(w0, w_out), :]
                part = jnp.dot(tap.reshape(n_main * w_out, c_in), w_tap,
                               preferred_element_type=jnp.float32)
                if first:
                    acc_ref[pl.ds(0, n_main * w_out), :] = part
                else:
                    acc_ref[pl.ds(0, n_main * w_out), :] += part

            if n_halo > 0:
                hh0 = h0 + n_main * stride - blk_h        # first needed halo row
                tap = halo_ref[0, _ds(hh0, n_halo), _ds(w0, w_out), :]
                part = jnp.dot(tap.reshape(n_halo * w_out, c_in), w_tap,
                               preferred_element_type=jnp.float32)
                acc_ref[pl.ds(n_main * w_out, n_halo * w_out), :] += part

    out = (acc_ref[...] + b_ref[...]).astype(o_ref.dtype)
    o_ref[0] = out.reshape(o_ref.shape[1], o_ref.shape[2], o_ref.shape[3])


def pad2d_meta(x_nchw, padding):
    """Reflect pad H and periodic (wrap) pad W by padding//2 per side (NCHW)."""
    pad_y, pad_x = padding
    if pad_y % 2 != 0 or pad_x % 2 != 0:
        raise ValueError("cannot do centered padding if padding is not even")
    py, px = pad_y // 2, pad_x // 2
    x = jnp.pad(x_nchw, ((0, 0), (0, 0), (py, py), (0, 0)), mode="reflect")
    return jnp.pad(x, ((0, 0), (0, 0), (0, 0), (px, px)), mode="wrap")


def conv2d_meta(x_nchw, weight_oihw, bias, *, stride=1, dilation=1,
                max_tile_hout=None, vmem_budget_bytes=None,
                vmem_limit_bytes=None):
    """Forward pass of Conv2d_meta (groups=1).  x: NCHW, weight: OIHW."""
    n, c_in, _, _ = x_nchw.shape
    c_out, c_in_w, kh, kw = weight_oihw.shape
    if c_in != c_in_w:
        raise NotImplementedError("groups=1 only")  # TODO(synk): groups > 1
    if kh != kw:
        raise ValueError("Conv2d_meta uses a single square kernel_size")
    pad = (kh - 1) * dilation
    if pad % 2 != 0:
        raise ValueError("cannot do centered padding if padding is not even")
    p = pad // 2

    # NCHW -> NHWC first, then pad: reflect along H, periodic (wrap) along W.
    # TODO(synk): fold the wrap/reflect pads into the kernel (edge-column roll
    # plus reflected first/last H halo blocks) to drop these wrapper HBM passes.
    x = jnp.transpose(x_nchw, (0, 2, 3, 1))
    if p:
        x = jnp.pad(x, ((0, 0), (p, p), (0, 0), (0, 0)), mode="reflect")
        x = jnp.pad(x, ((0, 0), (0, 0), (p, p), (0, 0)), mode="wrap")

    hp, wp = x.shape[1], x.shape[2]
    h_out = (hp - (kh - 1) * dilation - 1) // stride + 1
    w_out = (wp - (kw - 1) * dilation - 1) // stride + 1

    c_out_pad = ((c_out + 127) // 128) * 128            # lane-dense output slab
    act_dtype = x.dtype
    act_itemsize = act_dtype.itemsize
    halo_rows = max((kh - 1) * dilation + 1 - stride, 0)

    # ------------- generation-aware VMEM budgeting -------------
    vmem_cap = 64 * 1024 * 1024                          # conservative (v7x/TC)
    try:
        cap = getattr(pltpu.get_tpu_info(), "vmem_capacity_bytes", None)
        if cap:
            vmem_cap = int(cap)
    except Exception:
        pass
    if vmem_budget_bytes is None:
        # ~70 MiB on v5e/v6e (128 MiB VMEM), ~35 MiB on v7x (64 MiB VMEM).
        vmem_budget_bytes = int(vmem_cap * 0.55)

    def halo_block(blk_h_):
        if halo_rows == 0:
            return 0
        for cand in range(1, blk_h_ + 1):
            if blk_h_ % cand == 0 and cand >= halo_rows:
                return cand
        return blk_h_

    def est_vmem(t):
        blk_h_ = t * stride
        hb = halo_block(blk_h_)
        m = t * w_out
        need = 2 * blk_h_ * wp * c_in * act_itemsize          # main input x2 bufs
        need += 2 * hb * wp * c_in * act_itemsize             # halo rows x2 bufs
        need += 2 * kh * kw * c_in * c_out_pad * act_itemsize  # resident weights
        need += 2 * c_out_pad * 4                             # bias
        need += 2 * m * c_out_pad * act_itemsize              # output block x2
        need += m * c_out_pad * 4                             # f32 accumulator
        need += m * c_out_pad * 4                             # per-tap dot result
        need += m * max(c_in, 8) * act_itemsize               # tap value headroom
        return need

    # Keep >= 2 H tiles for batch-1 so v7x's two TensorCores both get work.
    min_n_h = 2 if n == 1 else 1
    cap_t = h_out if max_tile_hout is None else min(h_out, max_tile_hout)
    legal = [t for t in range(1, cap_t + 1)
             if h_out % t == 0 and halo_rows <= t * stride]
    if not legal:
        raise ValueError("no legal H tile for this kernel_size/stride/dilation")
    fitting = [t for t in legal if est_vmem(t) <= vmem_budget_bytes]
    preferred = [t for t in fitting if h_out // t >= min_n_h]
    if preferred:
        tile_hout = max(preferred)
    elif fitting:
        tile_hout = max(fitting)
    else:
        tile_hout = min(legal)        # nothing fits the budget: smallest tile

    blk_h = tile_hout * stride
    n_h = h_out // tile_hout
    has_halo = halo_rows > 0
    halo_blk = halo_block(blk_h) if has_halo else 0

    # Bottom-pad so every main/halo block is in range; the padded rows are
    # never read by a real output tap.
    hp_needed = n_h * blk_h + (halo_blk if has_halo else 0)
    if hp_needed > hp:
        x = jnp.pad(x, ((0, 0), (0, hp_needed - hp), (0, 0), (0, 0)))

    # Weights: (Cout, Cin, KH, KW) -> (KH*KW, Cin, Cout_pad) in the activation
    # dtype (consistent MXU dtype pair); bias stays f32 for the accumulator.
    w_pack = jnp.transpose(weight_oihw, (2, 3, 1, 0)).reshape(kh * kw, c_in, c_out)
    w_pack = jnp.pad(w_pack, ((0, 0), (0, 0), (0, c_out_pad - c_out)))
    w_pack = w_pack.astype(act_dtype)
    b_vec = jnp.pad(bias.astype(jnp.float32).reshape(1, c_out),
                    ((0, 0), (0, c_out_pad - c_out)))

    if vmem_limit_bytes is None:
        need = est_vmem(tile_hout)
        vmem_limit_bytes = int(min(vmem_cap, max(need + (8 << 20), 16 << 20)))

    kernel = functools.partial(
        _conv_meta_kernel, kh_size=kh, kw_size=kw, dilation=dilation,
        stride=stride, tile_hout=tile_hout, blk_h=blk_h, w_out=w_out,
        c_in=c_in, has_halo=has_halo)

    in_specs = [pl.BlockSpec((1, blk_h, wp, c_in), lambda i, j: (i, j, 0, 0))]
    args = [x]
    if has_halo:
        halo_step = blk_h // halo_blk
        in_specs.append(
            pl.BlockSpec((1, halo_blk, wp, c_in),
                         lambda i, j: (i, (j + 1) * halo_step, 0, 0)))
        args.append(x)
    in_specs += [
        pl.BlockSpec((kh * kw, c_in, c_out_pad), lambda i, j: (0, 0, 0)),
        pl.BlockSpec((1, c_out_pad), lambda i, j: (0, 0)),
    ]
    args += [w_pack, b_vec]

    flops = 2 * n * h_out * w_out * kh * kw * c_in * c_out
    bytes_accessed = (x.size * act_itemsize + w_pack.size * act_itemsize
                      + b_vec.size * 4
                      + n * h_out * w_out * c_out_pad * act_itemsize)

    out_pad = pl.pallas_call(
        kernel,
        out_shape=jax.ShapeDtypeStruct((n, h_out, w_out, c_out_pad), act_dtype),
        grid=(n, n_h),
        in_specs=in_specs,
        out_specs=pl.BlockSpec((1, tile_hout, w_out, c_out_pad),
                               lambda i, j: (i, j, 0, 0)),
        scratch_shapes=[pltpu.VMEM((tile_hout * w_out, c_out_pad), jnp.float32)],
        compiler_params=pltpu.CompilerParams(
            dimension_semantics=("parallel", "parallel"),
            vmem_limit_bytes=vmem_limit_bytes),
        cost_estimate=pl.CostEstimate(flops=flops, transcendentals=0,
                                      bytes_accessed=bytes_accessed),
    )(*args)

    out = out_pad[..., :c_out] if c_out_pad != c_out else out_pad
    # NHWC -> NCHW to match the nn.Module interface.
    # TODO(synk): keep NHWC downstream to drop this transpose round trip.
    return jnp.transpose(out, (0, 3, 1, 2))


if __name__ == "__main__":
    # Small shapes consistent with the module (nn.Conv2d, NCHW).
    N, C_IN, H, W = 2, 4, 16, 16
    C_OUT, K = 8, 3
    STRIDE, DILATION = 1, 1

    key = jax.random.PRNGKey(0)
    kx, kw_, kb = jax.random.split(key, 3)

    x = jax.random.normal(kx, (N, C_IN, H, W), dtype=jnp.float32)

    # Deterministic Conv2d-style init (uniform with 1/sqrt(fan_in) bound).
    fan_in = C_IN * K * K
    bound = 1.0 / math.sqrt(fan_in)
    weight = jax.random.uniform(kw_, (C_OUT, C_IN, K, K), jnp.float32,
                                minval=-bound, maxval=bound)
    bias = jax.random.uniform(kb, (C_OUT,), jnp.float32,
                              minval=-bound, maxval=bound)

    # max_tile_hout=8 -> a real (batch=2) x (H-tiles=2) grid with halo reads.
    out = conv2d_meta(x, weight, bias, stride=STRIDE, dilation=DILATION,
                      max_tile_hout=8)
    out = jax.block_until_ready(out)

    # Reference: identical pad2d_meta padding, then a valid conv via XLA.
    pad = (K - 1) * DILATION
    x_pad_ref = pad2d_meta(x, (pad, pad))
    ref = lax.conv_general_dilated(
        x_pad_ref, weight, window_strides=(STRIDE, STRIDE), padding="VALID",
        rhs_dilation=(DILATION, DILATION),
        dimension_numbers=("NCHW", "OIHW", "NCHW"),
    ) + bias.reshape(1, -1, 1, 1)
    ref = jax.block_until_ready(ref)

    assert out.shape == ref.shape, (out.shape, ref.shape)
    max_err = float(jnp.max(jnp.abs(out - ref)))
    assert jnp.allclose(out, ref, atol=1e-3, rtol=1e-3), max_err

    print("KERNEL_OK")
</pallas_src>

<mosaic_0001>
module attributes {stable_mosaic.version = 11 : i64} {
  func.func @_conv_meta_kernel(%arg0: i32, %arg1: i32, %arg2: memref<1x8x18x4xf32, #tpu.memory_space<vmem>>, %arg3: memref<1x2x18x4xf32, #tpu.memory_space<vmem>>, %arg4: memref<9x4x128xf32, #tpu.memory_space<vmem>>, %arg5: memref<1x128xf32, #tpu.memory_space<vmem>>, %arg6: memref<1x8x16x128xf32, #tpu.memory_space<vmem>>, %arg7: memref<128x128xf32, #tpu.memory_space<vmem>>) attributes {dimension_semantics = [#tpu.dimension_semantics<parallel>, #tpu.dimension_semantics<parallel>], iteration_bounds = array<i64: 2, 2>, scalar_prefetch = 0 : i64, scratch_operands = 1 : i64, tpu.core_type = #tpu.core_type<tc>, window_params = [{transform_indices = @transform_0, window_bounds = array<i64: 1, 8, 18, 4>}, {transform_indices = @transform_1, window_bounds = array<i64: 1, 2, 18, 4>}, {pipeline_mode = #tpu.pipeline_mode<synchronous>, transform_indices = @transform_2, window_bounds = array<i64: 9, 4, 128>}, {pipeline_mode = #tpu.pipeline_mode<synchronous>, transform_indices = @transform_3, window_bounds = array<i64: 1, 128>}, {transform_indices = @transform_4, window_bounds = array<i64: 1, 8, 16, 128>}]} {
    %c0 = arith.constant 0 : index
    %c0_0 = arith.constant 0 : index
    %c0_1 = arith.constant 0 : index
    %0 = vector.load %arg4[%c0, %c0_0, %c0_1] : memref<9x4x128xf32, #tpu.memory_space<vmem>>, vector<1x4x128xf32>
    %1 = vector.shape_cast %0 : vector<1x4x128xf32> to vector<4x128xf32>
    %c0_2 = arith.constant 0 : index
    %c0_3 = arith.constant 0 : index
    %c0_4 = arith.constant 0 : index
    %c0_5 = arith.constant 0 : index
    %2 = vector.load %arg2[%c0_2, %c0_3, %c0_4, %c0_5] : memref<1x8x18x4xf32, #tpu.memory_space<vmem>>, vector<1x8x16x4xf32>
    %3 = vector.shape_cast %2 : vector<1x8x16x4xf32> to vector<8x16x4xf32>
    %4 = vector.shape_cast %3 : vector<8x16x4xf32> to vector<128x4xf32>
    %cst = arith.constant dense<0.000000e+00> : vector<128x128xf32>
    %5 = tpu.matmul %4, %1, %cst {dimension_numbers = #tpu.dot_dimension_numbers<[1], [0], [0], [1], [0, 0, 1, 1], [], []>} : vector<128x4xf32>, vector<4x128xf32>, vector<128x128xf32> -> vector<128x128xf32>
    %c0_6 = arith.constant 0 : index
    %c0_7 = arith.constant 0 : index
    %6 = vector.load %arg7[%c0_6, %c0_7] : memref<128x128xf32, #tpu.memory_space<vmem>>, vector<128x128xf32>
    tpu.vector_store %arg7[%c0_6, %c0_7], %5 {strides = array<i32>} : memref<128x128xf32, #tpu.memory_space<vmem>>, vector<128x128xf32>,
    %c1 = arith.constant 1 : index
    %c0_8 = arith.constant 0 : index
    %c0_9 = arith.constant 0 : index
    %7 = vector.load %arg4[%c1, %c0_8, %c0_9] : memref<9x4x128xf32, #tpu.memory_space<vmem>>, vector<1x4x128xf32>
    %8 = vector.shape_cast %7 : vector<1x4x128xf32> to vector<4x128xf32>
    %c0_10 = arith.constant 0 : index
    %c0_11 = arith.constant 0 : index
    %c1_12 = arith.constant 1 : index
    %c0_13 = arith.constant 0 : index
    %9 = vector.load %arg2[%c0_10, %c0_11, %c1_12, %c0_13] : memref<1x8x18x4xf32, #tpu.memory_space<vmem>>, vector<1x8x16x4xf32>
    %10 = vector.shape_cast %9 : vector<1x8x16x4xf32> to vector<8x16x4xf32>
    %11 = vector.shape_cast %10 : vector<8x16x4xf32> to vector<128x4xf32>
    %cst_14 = arith.constant dense<0.000000e+00> : vector<128x128xf32>
    %12 = tpu.matmul %11, %8, %cst_14 {dimension_numbers = #tpu.dot_dimension_numbers<[1], [0], [0], [1], [0, 0, 1, 1], [], []>} : vector<128x4xf32>, vector<4x128xf32>, vector<128x128xf32> -> vector<128x128xf32>
    %c0_15 = arith.constant 0 : index
    %c0_16 = arith.constant 0 : index
    %13 = vector.load %arg7[%c0_15, %c0_16] : memref<128x128xf32, #tpu.memory_space<vmem>>, vector<128x128xf32>
    %14 = arith.addf %13, %12 : vector<128x128xf32>
    %c0_17 = arith.constant 0 : index
    %c0_18 = arith.constant 0 : index
    %15 = vector.load %arg7[%c0_17, %c0_18] : memref<128x128xf32, #tpu.memory_space<vmem>>, vector<128x128xf32>
    tpu.vector_store %arg7[%c0_17, %c0_18], %14 {strides = array<i32>} : memref<128x128xf32, #tpu.memory_space<vmem>>, vector<128x128xf32>,
    %c2 = arith.constant 2 : index
    %c0_19 = arith.constant 0 : index
    %c0_20 = arith.constant 0 : index
    %16 = vector.load %arg4[%c2, %c0_19, %c0_20] : memref<9x4x128xf32, #tpu.memory_space<vmem>>, vector<1x4x128xf32>
    %17 = vector.shape_cast %16 : vector<1x4x128xf32> to vector<4x128xf32>
    %c0_21 = arith.constant 0 : index
    %c0_22 = arith.constant 0 : index
    %c2_23 = arith.constant 2 : index
    %c0_24 = arith.constant 0 : index
    %18 = vector.load %arg2[%c0_21, %c0_22, %c2_23, %c0_24] : memref<1x8x18x4xf32, #tpu.memory_space<vmem>>, vector<1x8x16x4xf32>
    %19 = vector.shape_cast %18 : vector<1x8x16x4xf32> to vector<8x16x4xf32>
    %20 = vector.shape_cast %19 : vector<8x16x4xf32> to vector<128x4xf32>
    %cst_25 = arith.constant dense<0.000000e+00> : vector<128x128xf32>
    %21 = tpu.matmul %20, %17, %cst_25 {dimension_numbers = #tpu.dot_dimension_numbers<[1], [0], [0], [1], [0, 0, 1, 1], [], []>} : vector<128x4xf32>, vector<4x128xf32>, vector<128x128xf32> -> vector<128x128xf32>
    %c0_26 = arith.constant 0 : index
    %c0_27 = arith.constant 0 : index
    %22 = vector.load %arg7[%c0_26, %c0_27] : memref<128x128xf32, #tpu.memory_space<vmem>>, vector<128x128xf32>
    %23 = arith.addf %22, %21 : vector<128x128xf32>
    %c0_28 = arith.constant 0 : index
    %c0_29 = arith.constant 0 : index
    %24 = vector.load %arg7[%c0_28, %c0_29] : memref<128x128xf32, #tpu.memory_space<vmem>>, vector<128x128xf32>
    tpu.vector_store %arg7[%c0_28, %c0_29], %23 {strides = array<i32>} : memref<128x128xf32, #tpu.memory_space<vmem>>, vector<128x128xf32>,
    %c3 = arith.constant 3 : index
    %c0_30 = arith.constant 0 : index
    %c0_31 = arith.constant 0 : index
    %25 = vector.load %arg4[%c3, %c0_30, %c0_31] : memref<9x4x128xf32, #tpu.memory_space<vmem>>, vector<1x4x128xf32>
    %26 = vector.shape_cast %25 : vector<1x4x128xf32> to vector<4x128xf32>
    %c0_32 = arith.constant 0 : index
    %c1_33 = arith.constant 1 : index
    %c0_34 = arith.constant 0 : index
    %c0_35 = arith.constant 0 : index
    %27 = vector.load %arg2[%c0_32, %c1_33, %c0_34, %c0_35] : memref<1x8x18x4xf32, #tpu.memory_space<vmem>>, vector<1x7x16x4xf32>
    %28 = vector.shape_cast %27 : vector<1x7x16x4xf32> to vector<7x16x4xf32>
    %29 = vector.shape_cast %28 : vector<7x16x4xf32> to vector<112x4xf32>
    %cst_36 = arith.constant dense<0.000000e+00> : vector<112x128xf32>
    %30 = tpu.matmul %29, %26, %cst_36 {dimension_numbers = #tpu.dot_dimension_numbers<[1], [0], [0], [1], [0, 0, 1, 1], [], []>} : vector<112x4xf32>, vector<4x128xf32>, vector<112x128xf32> -> vector<112x128xf32>
    %c0_37 = arith.constant 0 : index
    %c0_38 = arith.constant 0 : index
    %31 = vector.load %arg7[%c0_37, %c0_38] : memref<128x128xf32, #tpu.memory_space<vmem>>, vector<112x128xf32>
    %32 = arith.addf %31, %30 : vector<112x128xf32>
    %c0_39 = arith.constant 0 : index
    %c0_40 = arith.constant 0 : index
    %33 = vector.load %arg7[%c0_39, %c0_40] : memref<128x128xf32, #tpu.memory_space<vmem>>, vector<112x128xf32>
    tpu.vector_store %arg7[%c0_39, %c0_40], %32 {strides = array<i32>} : memref<128x128xf32, #tpu.memory_space<vmem>>, vector<112x128xf32>,
    %c0_41 = arith.constant 0 : index
    %c0_42 = arith.constant 0 : index
    %c0_43 = arith.constant 0 : index
    %c0_44 = arith.constant 0 : index
    %34 = vector.load %arg3[%c0_41, %c0_42, %c0_43, %c0_44] : memref<1x2x18x4xf32, #tpu.memory_space<vmem>>, vector<1x1x16x4xf32>
    %35 = vector.shape_cast %34 : vector<1x1x16x4xf32> to vector<1x16x4xf32>
    %36 = vector.shape_cast %35 : vector<1x16x4xf32> to vector<16x4xf32>
    %cst_45 = arith.constant dense<0.000000e+00> : vector<16x128xf32>
    %37 = tpu.matmul %36, %26, %cst_45 {dimension_numbers = #tpu.dot_dimension_numbers<[1], [0], [0], [1], [0, 0, 1, 1], [], []>} : vector<16x4xf32>, vector<4x128xf32>, vector<16x128xf32> -> vector<16x128xf32>
    %c112 = arith.constant 112 : index
    %c0_46 = arith.constant 0 : index
    %38 = vector.load %arg7[%c112, %c0_46] : memref<128x128xf32, #tpu.memory_space<vmem>>, vector<16x128xf32>
    %39 = arith.addf %38, %37 : vector<16x128xf32>
    %c112_47 = arith.constant 112 : index
    %c0_48 = arith.constant 0 : index
    %40 = vector.load %arg7[%c112_47, %c0_48] : memref<128x128xf32, #tpu.memory_space<vmem>>, vector<16x128xf32>
    tpu.vector_store %arg7[%c112_47, %c0_48], %39 {strides = array<i32>} : memref<128x128xf32, #tpu.memory_space<vmem>>, vector<16x128xf32>,
    %c4 = arith.constant 4 : index
    %c0_49 = arith.constant 0 : index
    %c0_50 = arith.constant 0 : index
    %41 = vector.load %arg4[%c4, %c0_49, %c0_50] : memref<9x4x128xf32, #tpu.memory_space<vmem>>, vector<1x4x128xf32>
    %42 = vector.shape_cast %41 : vector<1x4x128xf32> to vector<4x128xf32>
    %c0_51 = arith.constant 0 : index
    %c1_52 = arith.constant 1 : index
    %c1_53 = arith.constant 1 : index
    %c0_54 = arith.constant 0 : index
    %43 = vector.load %arg2[%c0_51, %c1_52, %c1_53, %c0_54] : memref<1x8x18x4xf32, #tpu.memory_space<vmem>>, vector<1x7x16x4xf32>
    %44 = vector.shape_cast %43 : vector<1x7x16x4xf32> to vector<7x16x4xf32>
    %45 = vector.shape_cast %44 : vector<7x16x4xf32> to vector<112x4xf32>
    %cst_55 = arith.constant dense<0.000000e+00> : vector<112x128xf32>
    %46 = tpu.matmul %45, %42, %cst_55 {dimension_numbers = #tpu.dot_dimension_numbers<[1], [0], [0], [1], [0, 0, 1, 1], [], []>} : vector<112x4xf32>, vector<4x128xf32>, vector<112x128xf32> -> vector<112x128xf32>
    %c0_56 = arith.constant 0 : index
    %c0_57 = arith.constant 0 : index
    %47 = vector.load %arg7[%c0_56, %c0_57] : memref<128x128xf32, #tpu.memory_space<vmem>>, vector<112x128xf32>
    %48 = arith.addf %47, %46 : vector<112x128xf32>
    %c0_58 = arith.constant 0 : index
    %c0_59 = arith.constant 0 : index
    %49 = vector.load %arg7[%c0_58, %c0_59] : memref<128x128xf32, #tpu.memory_space<vmem>>, vector<112x128xf32>
    tpu.vector_store %arg7[%c0_58, %c0_59], %48 {strides = array<i32>} : memref<128x128xf32, #tpu.memory_space<vmem>>, vector<112x128xf32>,
    %c0_60 = arith.constant 0 : index
    %c0_61 = arith.constant 0 : index
    %c1_62 = arith.constant 1 : index
    %c0_63 = arith.constant 0 : index
    %50 = vector.load %arg3[%c0_60, %c0_61, %c1_62, %c0_63] : memref<1x2x18x4xf32, #tpu.memory_space<vmem>>, vector<1x1x16x4xf32>
    %51 = vector.shape_cast %50 : vector<1x1x16x4xf32> to vector<1x16x4xf32>
    %52 = vector.shape_cast %51 : vector<1x16x4xf32> to vector<16x4xf32>
    %cst_64 = arith.constant dense<0.000000e+00> : vector<16x128xf32>
    %53 = tpu.matmul %52, %42, %cst_64 {dimension_numbers = #tpu.dot_dimension_numbers<[1], [0], [0], [1], [0, 0, 1, 1], [], []>} : vector<16x4xf32>, vector<4x128xf32>, vector<16x128xf32> -> vector<16x128xf32>
    %c112_65 = arith.constant 112 : index
    %c0_66 = arith.constant 0 : index
    %54 = vector.load %arg7[%c112_65, %c0_66] : memref<128x128xf32, #tpu.memory_space<vmem>>, vector<16x128xf32>
    %55 = arith.addf %54, %53 : vector<16x128xf32>
    %c112_67 = arith.constant 112 : index
    %c0_68 = arith.constant 0 : index
    %56 = vector.load %arg7[%c112_67, %c0_68] : memref<128x128xf32, #tpu.memory_space<vmem>>, vector<16x128xf32>
    tpu.vector_store %arg7[%c112_67, %c0_68], %55 {strides = array<i32>} : memref<128x128xf32, #tpu.memory_space<vmem>>, vector<16x128xf32>,
    %c5 = arith.constant 5 : index
    %c0_69 = arith.constant 0 : index
    %c0_70 = arith.constant 0 : index
    %57 = vector.load %arg4[%c5, %c0_69, %c0_70] : memref<9x4x128xf32, #tpu.memory_space<vmem>>, vector<1x4x128xf32>
    %58 = vector.shape_cast %57 : vector<1x4x128xf32> to vector<4x128xf32>
    %c0_71 = arith.constant 0 : index
    %c1_72 = arith.constant 1 : index
    %c2_73 = arith.constant 2 : index
    %c0_74 = arith.constant 0 : index
    %59 = vector.load %arg2[%c0_71, %c1_72, %c2_73, %c0_74] : memref<1x8x18x4xf32, #tpu.memory_space<vmem>>, vector<1x7x16x4xf32>
    %60 = vector.shape_cast %59 : vector<1x7x16x4xf32> to vector<7x16x4xf32>
    %61 = vector.shape_cast %60 : vector<7x16x4xf32> to vector<112x4xf32>
    %cst_75 = arith.constant dense<0.000000e+00> : vector<112x128xf32>
    %62 = tpu.matmul %61, %58, %cst_75 {dimension_numbers = #tpu.dot_dimension_numbers<[1], [0], [0], [1], [0, 0, 1, 1], [], []>} : vector<112x4xf32>, vector<4x128xf32>, vector<112x128xf32> -> vector<112x128xf32>
    %c0_76 = arith.constant 0 : index
    %c0_77 = arith.constant 0 : index
    %63 = vector.load %arg7[%c0_76, %c0_77] : memref<128x128xf32, #tpu.memory_space<vmem>>, vector<112x128xf32>
    %64 = arith.addf %63, %62 : vector<112x128xf32>
    %c0_78 = arith.constant 0 : index
    %c0_79 = arith.constant 0 : index
    %65 = vector.load %arg7[%c0_78, %c0_79] : memref<128x128xf32, #tpu.memory_space<vmem>>, vector<112x128xf32>
    tpu.vector_store %arg7[%c0_78, %c0_79], %64 {strides = array<i32>} : memref<128x128xf32, #tpu.memory_space<vmem>>, vector<112x128xf32>,
    %c0_80 = arith.constant 0 : index
    %c0_81 = arith.constant 0 : index
    %c2_82 = arith.constant 2 : index
    %c0_83 = arith.constant 0 : index
    %66 = vector.load %arg3[%c0_80, %c0_81, %c2_82, %c0_83] : memref<1x2x18x4xf32, #tpu.memory_space<vmem>>, vector<1x1x16x4xf32>
    %67 = vector.shape_cast %66 : vector<1x1x16x4xf32> to vector<1x16x4xf32>
    %68 = vector.shape_cast %67 : vector<1x16x4xf32> to vector<16x4xf32>
    %cst_84 = arith.constant dense<0.000000e+00> : vector<16x128xf32>
    %69 = tpu.matmul %68, %58, %cst_84 {dimension_numbers = #tpu.dot_dimension_numbers<[1], [0], [0], [1], [0, 0, 1, 1], [], []>} : vector<16x4xf32>, vector<4x128xf32>, vector<16x128xf32> -> vector<16x128xf32>
    %c112_85 = arith.constant 112 : index
    %c0_86 = arith.constant 0 : index
    %70 = vector.load %arg7[%c112_85, %c0_86] : memref<128x128xf32, #tpu.memory_space<vmem>>, vector<16x128xf32>
    %71 = arith.addf %70, %69 : vector<16x128xf32>
    %c112_87 = arith.constant 112 : index
    %c0_88 = arith.constant 0 : index
    %72 = vector.load %arg7[%c112_87, %c0_88] : memref<128x128xf32, #tpu.memory_space<vmem>>, vector<16x128xf32>
    tpu.vector_store %arg7[%c112_87, %c0_88], %71 {strides = array<i32>} : memref<128x128xf32, #tpu.memory_space<vmem>>, vector<16x128xf32>,
    %c6 = arith.constant 6 : index
    %c0_89 = arith.constant 0 : index
    %c0_90 = arith.constant 0 : index
    %73 = vector.load %arg4[%c6, %c0_89, %c0_90] : memref<9x4x128xf32, #tpu.memory_space<vmem>>, vector<1x4x128xf32>
    %74 = vector.shape_cast %73 : vector<1x4x128xf32> to vector<4x128xf32>
    %c0_91 = arith.constant 0 : index
    %c2_92 = arith.constant 2 : index
    %c0_93 = arith.constant 0 : index
    %c0_94 = arith.constant 0 : index
    %75 = vector.load %arg2[%c0_91, %c2_92, %c0_93, %c0_94] : memref<1x8x18x4xf32, #tpu.memory_space<vmem>>, vector<1x6x16x4xf32>
    %76 = vector.shape_cast %75 : vector<1x6x16x4xf32> to vector<6x16x4xf32>
    %77 = vector.shape_cast %76 : vector<6x16x4xf32> to vector<96x4xf32>
    %cst_95 = arith.constant dense<0.000000e+00> : vector<96x128xf32>
    %78 = tpu.matmul %77, %74, %cst_95 {dimension_numbers = #tpu.dot_dimension_numbers<[1], [0], [0], [1], [0, 0, 1, 1], [], []>} : vector<96x4xf32>, vector<4x128xf32>, vector<96x128xf32> -> vector<96x128xf32>
    %c0_96 = arith.constant 0 : index
    %c0_97 = arith.constant 0 : index
    %79 = vector.load %arg7[%c0_96, %c0_97] : memref<128x128xf32, #tpu.memory_space<vmem>>, vector<96x128xf32>
    %80 = arith.addf %79, %78 : vector<96x128xf32>
    %c0_98 = arith.constant 0 : index
    %c0_99 = arith.constant 0 : index
    %81 = vector.load %arg7[%c0_98, %c0_99] : memref<128x128xf32, #tpu.memory_space<vmem>>, vector<96x128xf32>
    tpu.vector_store %arg7[%c0_98, %c0_99], %80 {strides = array<i32>} : memref<128x128xf32, #tpu.memory_space<vmem>>, vector<96x128xf32>,
    %c0_100 = arith.constant 0 : index
    %c0_101 = arith.constant 0 : index
    %c0_102 = arith.constant 0 : index
    %c0_103 = arith.constant 0 : index
    %82 = vector.load %arg3[%c0_100, %c0_101, %c0_102, %c0_103] : memref<1x2x18x4xf32, #tpu.memory_space<vmem>>, vector<1x2x16x4xf32>
    %83 = vector.shape_cast %82 : vector<1x2x16x4xf32> to vector<2x16x4xf32>
    %84 = vector.shape_cast %83 : vector<2x16x4xf32> to vector<32x4xf32>
    %cst_104 = arith.constant dense<0.000000e+00> : vector<32x128xf32>
    %85 = tpu.matmul %84, %74, %cst_104 {dimension_numbers = #tpu.dot_dimension_numbers<[1], [0], [0], [1], [0, 0, 1, 1], [], []>} : vector<32x4xf32>, vector<4x128xf32>, vector<32x128xf32> -> vector<32x128xf32>
    %c96 = arith.constant 96 : index
    %c0_105 = arith.constant 0 : index
    %86 = vector.load %arg7[%c96, %c0_105] : memref<128x128xf32, #tpu.memory_space<vmem>>, vector<32x128xf32>
    %87 = arith.addf %86, %85 : vector<32x128xf32>
    %c96_106 = arith.constant 96 : index
    %c0_107 = arith.constant 0 : index
    %88 = vector.load %arg7[%c96_106, %c0_107] : memref<128x128xf32, #tpu.memory_space<vmem>>, vector<32x128xf32>
    tpu.vector_store %arg7[%c96_106, %c0_107], %87 {strides = array<i32>} : memref<128x128xf32, #tpu.memory_space<vmem>>, vector<32x128xf32>,
    %c7 = arith.constant 7 : index
    %c0_108 = arith.constant 0 : index
    %c0_109 = arith.constant 0 : index
    %89 = vector.load %arg4[%c7, %c0_108, %c0_109] : memref<9x4x128xf32, #tpu.memory_space<vmem>>, vector<1x4x128xf32>
    %90 = vector.shape_cast %89 : vector<1x4x128xf32> to vector<4x128xf32>
    %c0_110 = arith.constant 0 : index
    %c2_111 = arith.constant 2 : index
    %c1_112 = arith.constant 1 : index
    %c0_113 = arith.constant 0 : index
    %91 = vector.load %arg2[%c0_110, %c2_111, %c1_112, %c0_113] : memref<1x8x18x4xf32, #tpu.memory_space<vmem>>, vector<1x6x16x4xf32>
    %92 = vector.shape_cast %91 : vector<1x6x16x4xf32> to vector<6x16x4xf32>
    %93 = vector.shape_cast %92 : vector<6x16x4xf32> to vector<96x4xf32>
    %cst_114 = arith.constant dense<0.000000e+00> : vector<96x128xf32>
    %94 = tpu.matmul %93, %90, %cst_114 {dimension_numbers = #tpu.dot_dimension_numbers<[1], [0], [0], [1], [0, 0, 1, 1], [], []>} : vector<96x4xf32>, vector<4x128xf32>, vector<96x128xf32> -> vector<96x128xf32>
    %c0_115 = arith.constant 0 : index
    %c0_116 = arith.constant 0 : index
    %95 = vector.load %arg7[%c0_115, %c0_116] : memref<128x128xf32, #tpu.memory_space<vmem>>, vector<96x128xf32>
    %96 = arith.addf %95, %94 : vector<96x128xf32>
    %c0_117 = arith.constant 0 : index
    %c0_118 = arith.constant 0 : index
    %97 = vector.load %arg7[%c0_117, %c0_118] : memref<128x128xf32, #tpu.memory_space<vmem>>, vector<96x128xf32>
    tpu.vector_store %arg7[%c0_117, %c0_118], %96 {strides = array<i32>} : memref<128x128xf32, #tpu.memory_space<vmem>>, vector<96x128xf32>,
    %c0_119 = arith.constant 0 : index
    %c0_120 = arith.constant 0 : index
    %c1_121 = arith.constant 1 : index
    %c0_122 = arith.constant 0 : index
    %98 = vector.load %arg3[%c0_119, %c0_120, %c1_121, %c0_122] : memref<1x2x18x4xf32, #tpu.memory_space<vmem>>, vector<1x2x16x4xf32>
    %99 = vector.shape_cast %98 : vector<1x2x16x4xf32> to vector<2x16x4xf32>
    %100 = vector.shape_cast %99 : vector<2x16x4xf32> to vector<32x4xf32>
    %cst_123 = arith.constant dense<0.000000e+00> : vector<32x128xf32>
    %101 = tpu.matmul %100, %90, %cst_123 {dimension_numbers = #tpu.dot_dimension_numbers<[1], [0], [0], [1], [0, 0, 1, 1], [], []>} : vector<32x4xf32>, vector<4x128xf32>, vector<32x128xf32> -> vector<32x128xf32>
    %c96_124 = arith.constant 96 : index
    %c0_125 = arith.constant 0 : index
    %102 = vector.load %arg7[%c96_124, %c0_125] : memref<128x128xf32, #tpu.memory_space<vmem>>, vector<32x128xf32>
    %103 = arith.addf %102, %101 : vector<32x128xf32>
    %c96_126 = arith.constant 96 : index
    %c0_127 = arith.constant 0 : index
    %104 = vector.load %arg7[%c96_126, %c0_127] : memref<128x128xf32, #tpu.memory_space<vmem>>, vector<32x128xf32>
    tpu.vector_store %arg7[%c96_126, %c0_127], %103 {strides = array<i32>} : memref<128x128xf32, #tpu.memory_space<vmem>>, vector<32x128xf32>,
    %c8 = arith.constant 8 : index
    %c0_128 = arith.constant 0 : index
    %c0_129 = arith.constant 0 : index
    %105 = vector.load %arg4[%c8, %c0_128, %c0_129] : memref<9x4x128xf32, #tpu.memory_space<vmem>>, vector<1x4x128xf32>
    %106 = vector.shape_cast %105 : vector<1x4x128xf32> to vector<4x128xf32>
    %c0_130 = arith.constant 0 : index
    %c2_131 = arith.constant 2 : index
    %c2_132 = arith.constant 2 : index
    %c0_133 = arith.constant 0 : index
    %107 = vector.load %arg2[%c0_130, %c2_131, %c2_132, %c0_133] : memref<1x8x18x4xf32, #tpu.memory_space<vmem>>, vector<1x6x16x4xf32>
    %108 = vector.shape_cast %107 : vector<1x6x16x4xf32> to vector<6x16x4xf32>
    %109 = vector.shape_cast %108 : vector<6x16x4xf32> to vector<96x4xf32>
    %cst_134 = arith.constant dense<0.000000e+00> : vector<96x128xf32>
    %110 = tpu.matmul %109, %106, %cst_134 {dimension_numbers = #tpu.dot_dimension_numbers<[1], [0], [0], [1], [0, 0, 1, 1], [], []>} : vector<96x4xf32>, vector<4x128xf32>, vector<96x128xf32> -> vector<96x128xf32>
    %c0_135 = arith.constant 0 : index
    %c0_136 = arith.constant 0 : index
    %111 = vector.load %arg7[%c0_135, %c0_136] : memref<128x128xf32, #tpu.memory_space<vmem>>, vector<96x128xf32>
    %112 = arith.addf %111, %110 : vector<96x128xf32>
    %c0_137 = arith.constant 0 : index
    %c0_138 = arith.constant 0 : index
    %113 = vector.load %arg7[%c0_137, %c0_138] : memref<128x128xf32, #tpu.memory_space<vmem>>, vector<96x128xf32>
    tpu.vector_store %arg7[%c0_137, %c0_138], %112 {strides = array<i32>} : memref<128x128xf32, #tpu.memory_space<vmem>>, vector<96x128xf32>,
    %c0_139 = arith.constant 0 : index
    %c0_140 = arith.constant 0 : index
    %c2_141 = arith.constant 2 : index
    %c0_142 = arith.constant 0 : index
    %114 = vector.load %arg3[%c0_139, %c0_140, %c2_141, %c0_142] : memref<1x2x18x4xf32, #tpu.memory_space<vmem>>, vector<1x2x16x4xf32>
    %115 = vector.shape_cast %114 : vector<1x2x16x4xf32> to vector<2x16x4xf32>
    %116 = vector.shape_cast %115 : vector<2x16x4xf32> to vector<32x4xf32>
    %cst_143 = arith.constant dense<0.000000e+00> : vector<32x128xf32>
    %117 = tpu.matmul %116, %106, %cst_143 {dimension_numbers = #tpu.dot_dimension_numbers<[1], [0], [0], [1], [0, 0, 1, 1], [], []>} : vector<32x4xf32>, vector<4x128xf32>, vector<32x128xf32> -> vector<32x128xf32>
    %c96_144 = arith.constant 96 : index
    %c0_145 = arith.constant 0 : index
    %118 = vector.load %arg7[%c96_144, %c0_145] : memref<128x128xf32, #tpu.memory_space<vmem>>, vector<32x128xf32>
    %119 = arith.addf %118, %117 : vector<32x128xf32>
    %c96_146 = arith.constant 96 : index
    %c0_147 = arith.constant 0 : index
    %120 = vector.load %arg7[%c96_146, %c0_147] : memref<128x128xf32, #tpu.memory_space<vmem>>, vector<32x128xf32>
    tpu.vector_store %arg7[%c96_146, %c0_147], %119 {strides = array<i32>} : memref<128x128xf32, #tpu.memory_space<vmem>>, vector<32x128xf32>,
    %c0_148 = arith.constant 0 : index
    %c0_149 = arith.constant 0 : index
    %121 = vector.load %arg7[%c0_148, %c0_149] : memref<128x128xf32, #tpu.memory_space<vmem>>, vector<128x128xf32>
    %c0_150 = arith.constant 0 : index
    %c0_151 = arith.constant 0 : index
    %122 = vector.load %arg5[%c0_150, %c0_151] : memref<1x128xf32, #tpu.memory_space<vmem>>, vector<1x128xf32>
    %123 = vector.broadcast %122 : vector<1x128xf32> to vector<128x128xf32>
    %124 = arith.addf %121, %123 : vector<128x128xf32>
    %125 = vector.shape_cast %124 : vector<128x128xf32> to vector<8x16x128xf32>
    %c0_152 = arith.constant 0 : index
    %c0_153 = arith.constant 0 : index
    %c0_154 = arith.constant 0 : index
    %c0_155 = arith.constant 0 : index
    %126 = vector.load %arg6[%c0_152, %c0_153, %c0_154, %c0_155] : memref<1x8x16x128xf32, #tpu.memory_space<vmem>>, vector<1x8x16x128xf32>
    %127 = vector.shape_cast %126 : vector<1x8x16x128xf32> to vector<8x16x128xf32>
    %128 = vector.shape_cast %125 : vector<8x16x128xf32> to vector<1x8x16x128xf32>
    tpu.vector_store %arg6[%c0_152, %c0_153, %c0_154, %c0_155], %128 {strides = array<i32>} : memref<1x8x16x128xf32, #tpu.memory_space<vmem>>, vector<1x8x16x128xf32>,
    return
  }
  func.func @transform_0(%arg0: i32, %arg1: i32) -> (i32, i32, i32, i32) {
    %c0_i32 = arith.constant 0 : i32
    %c0_i32_0 = arith.constant 0 : i32
    %c0_i32_1 = arith.constant 0 : i32
    return %arg0, %arg1, %c0_i32, %c0_i32_0 : i32, i32, i32, i32
  }
  func.func @transform_1(%arg0: i32, %arg1: i32) -> (i32, i32, i32, i32) {
    %c1_i32 = arith.constant 1 : i32
    %0 = arith.addi %arg1, %c1_i32 : i32
    %c4_i32 = arith.constant 4 : i32
    %1 = arith.muli %0, %c4_i32 : i32
    %c0_i32 = arith.constant 0 : i32
    %c0_i32_0 = arith.constant 0 : i32
    %c0_i32_1 = arith.constant 0 : i32
    return %arg0, %1, %c0_i32, %c0_i32_0 : i32, i32, i32, i32
  }
  func.func @transform_2(%arg0: i32, %arg1: i32) -> (i32, i32, i32) {
    %c0_i32 = arith.constant 0 : i32
    %c0_i32_0 = arith.constant 0 : i32
    %c0_i32_1 = arith.constant 0 : i32
    %c0_i32_2 = arith.constant 0 : i32
    return %c0_i32, %c0_i32_0, %c0_i32_1 : i32, i32, i32
  }
  func.func @transform_3(%arg0: i32, %arg1: i32) -> (i32, i32) {
    %c0_i32 = arith.constant 0 : i32
    %c0_i32_0 = arith.constant 0 : i32
    %c0_i32_1 = arith.constant 0 : i32
    return %c0_i32, %c0_i32_0 : i32, i32
  }
  func.func @transform_4(%arg0: i32, %arg1: i32) -> (i32, i32, i32, i32) {
    %c0_i32 = arith.constant 0 : i32
    %c0_i32_0 = arith.constant 0 : i32
    %c0_i32_1 = arith.constant 0 : i32
    return %arg0, %arg1, %c0_i32, %c0_i32_0 : i32, i32, i32, i32
  }
}

</mosaic_0001>

<bundles_post_ra>
// kernel: tpu_custom_call.1
= control target key start
LH: loop header
LB: loop body
LE: loop exit
PB: predicated region body
PF: predicated region fallthrough
CT: control target
= control target key end

     0   :  { %9 = vsyncpa [#allocation4], 0  ;;  %s4955_s0 = inlined_call_operand.vmem [shape: f32[2,18,18,4], index: 0, kind: input, shape index: {}]   ;;  %s4956_s1 = inlined_call_operand.vmem [shape: f32[2,18,18,4], index: 1, kind: input, shape index: {}]   ;;  %s4957_s2 = inlined_call_operand.vmem [shape: f32[9,4,128], index: 2, kind: input, shape index: {}]   ;;  %s4958_s3 = inlined_call_operand.vmem [shape: f32[1,128], index: 3, kind: input, shape index: {}]   ;;  %s4959_s4 = inlined_call_operand.hbm [shape: f32[2,16,16,128], index: 4, kind: output, shape index: {}]  }
   0x1   :  { %11 = vsyncpa [#allocation4 + $0x1], 0  ;;  %s4086_s15 = smov 0   ;;  %s4088_s16 = smov 0  }
   0x2   :  { %s4090_s17 = smov 0   ;;  %s4092_s18 = smov 0  }
   0x3   :  { %s4094_s19 = smov 0   ;;  %s4096_s20 = smov 0  }
   0x4   :  { %s4098_s21 = smov 0   ;;  %s4100_s22 = smov 0  }
   0x5 LB: > { %s3205_s23 = sadd.s32 4294967295, %s4056_s22   ;;  %s3206_s24 = sadd.s32 4294967294, %s4056_s22   ;;  %s4056_s22 = sphi %s4100_s22, %s17_s22   ;;  %s4052_s21 = sphi %s4098_s21, %s5008_s21   ;;  %s4048_s20 = sphi %s4096_s20, %s5007_s20   ;;  %s4044_s19 = sphi %s4094_s19, %s5006_s19   ;;  %s4040_s18 = sphi %s4092_s18, %s5005_s18   ;;  %s4036_s17 = sphi %s4090_s17, %s5004_s17   ;;  %s4032_s16 = sphi %s4088_s16, %s5003_s16   ;;  %s4028_s15 = sphi %s4086_s15, %s5002_s15  }
   0x6   : > { %s26_s25 = sadd.s32 1, %s4048_s20  ;;  %s29_s26 = sadd.s32 1, %s4052_s21 }
   0x7   : > { %p27_p0 = scmp.ge.s32.totalorder %s26_s25, 2  ;;  %p150_p1 = scmp.ne.s32.totalorder %s4036_s17, %s4032_s16 }
   0x8   : > { %p151_p2 = scmp.eq.s32.totalorder %s3205_s23, 3  ;;  %p156_p5 = scmp.ne.s32.totalorder %s4032_s16, %s4028_s15 }
   0x9   : > { %s5010_s25 = smov (%p27_p0, %s26_s25), 0  ;;  %s5012_s26 = smov (!%p27_p0, %s29_s26), %s4052_s21 }
   0xa   : > { %s136_s27 = ssub.s32 %s4048_s20, %s5010_s25  ;;  %p4137_p3 = por %p151_p2, %p150_p1 }
   0xb   : > { %p31_p4 = scmp.ge.s32.totalorder %s5012_s26, 2  ;;  %p157_p6 = scmp.eq.s32.totalorder %s3206_s24, 3 }
   0xc   : > { %p3211_p7 = scmp.ge.s32.totalorder %s4056_s22, 1  ;;  %p223_p9 = scmp.lt.s32.totalorder %s4056_s22, 5 }
   0xd   : > { %s5014_s26 = smov (%p31_p4, %s5012_s26), 0  ;;  %p4146_p8 = por %p157_p6, %p156_p5 }
   0xe   : > { %s135_s30 = ssub.s32 %s4052_s21, %s5014_s26  ;;  %s140_s5 = sadd.s32 1, %s4036_s17 }
   0xf   : > { %s137_s6 = sor.u32 %s136_s27, %s135_s30  ;;  %p224_p10 = pnand %p3211_p7, %p223_p9 }
  0x10   : > { %p138_p11 = scmp.eq.s32.totalorder %s137_s6, 0 }
  0x11   : > { %227 = sbr.rel (%p224_p10) target bundleno = 387 (0x183), region = 36 }
  0x12   : > { %s4155_s7 = scalar_select %p138_p11, %s4036_s17, %s140_s5  }
  0x16   : > { %v308_v0 = vld [vmem:[%s4957_s2] sm:$0xf]  ;;  %vm374_vm0 = vcmask 1043456   ;;  %s3213_s10 = sshll.u32 %s4040_s18, 3  ;;  %p277_p12 = scmp.lt.s32.totalorder %s4044_s19, 1  ;;  %vm325_vm1 = vcmask 31744  }
  0x17   : > { %3640 = vmatprep.subr.msk.mxu0 %vm374_vm0, %v308_v0  ;;  %3886 = vmatprep.subr.msk.mxu1 %vm374_vm0, %v308_v0  ;;  %p279_p13 = scmp.lt.s32.totalorder %s3213_s10, 17  ;;  %v3235_v1 = vld [vmem:[%s4957_s2 + $0x4] sm:$0xf]  ;;  %v3253_v2 = vld [vmem:[%s4957_s2 + $0x8] sm:$0xf]  ;;  %s3480_s23 = sadd.s32 8, %s3213_s10 }
  0x18   : > { %3641 = vmatpush3.msk.msra.mxu0 %vm374_vm0, %v308_v0  ;;  %3887 = vmatpush3.msk.msra.mxu1 %vm374_vm0, %v308_v0  ;;  %s278_s24 = scalar_select %p277_p12, %s4044_s19, 1  ;;  %v4205_v9 = vld [vmem:[%s4957_s2 + $0xc] sm:$0xf]  ;;  %v4210_v10 = vld [vmem:[%s4957_s2 + $0x10] sm:$0xf] }
  0x19   : > { %s5016_s10 = smov (!%p279_p13, %s3213_s10), 17  ;;  %3666 = vmatprep.subr.msk.mxu1 %vm374_vm0, %v3235_v1  ;;  %3692 = vmatprep.subr.msk.mxu0 %vm374_vm0, %v3253_v2  ;;  %p297_p0 = scmp.lt.s32.totalorder %s3480_s23, 17  ;;  %v4343_v37 = vld [vmem:[%s4957_s2 + $0x14] sm:$0xf]  ;;  %v3370_v54 = vld [vmem:[%s4957_s2 + $0x18] sm:$0xf] }
  0x1a   : > { %s3889_s27 = smul.u32 54, %s278_s24  ;;  %v3401_v59 = vld [vmem:[%s4957_s2 + $0x1c] sm:$0xf]  ;;  %v3432_v62 = vld [vmem:[%s4957_s2 + $0x20] sm:$0xf]  ;;  %s268_s24 = sand.u32 1, %s4032_s16  }
  0x1b   : > { %s3888_s30 = smul.u32 3, %s5016_s10  ;;  %s5018_s23 = smov (!%p297_p0, %s3480_s23), 17 }
  0x1c   : > { %s3890_s8 = smul.u32 3, %s5018_s23  ;;  %s3467_s9 = sshll.u32 %s4044_s19, 5 }
  0x1d   : > { %s283_s5 = sadd.s32 %s3889_s27, %s3888_s30  ;;  %s4904_s14 = scalar_lea.sflag [#allocation4], %s268_s24 }
  0x1e   : > { %s3214_s6 = sshll.u32 %s283_s5, 3  ;;  %s4185_s10 = sadd.s32 %s3890_s8, %s3889_s27 }
  0x1f   : > { %s4178_s12 = scalar_lea.vmem %s4955_s0, %s3214_s6  ;;  %s3217_s8 = sshll.u32 %s4185_s10, 3 }
  0x20   : > { %v309_v3 = vld [vmem:[%s4178_s12] sm:$0xff]  ;;  %v4182_v4 = vld [vmem:[%s4178_s12 + $0x90] sm:$0xff]  ;;  %v310_v5 = vld [vmem:[%s4178_s12 + $0x8] sm:$0xff]  ;;  %s3212_s27 = sshll.u32 %s268_s24, 7 }
  0x21   : > { %3642 = vmatprep.mubr.msk.f32.mxu0 %vm325_vm1, %v309_v3  ;;  %3660 = vmatprep.mubr.msk.f32.mxu1 %vm325_vm1, %v4182_v4  ;;  %v4191_v6 = vld [vmem:[%s4178_s12 + $0x98] sm:$0xff]  ;;  %v4197_v8 = vld [vmem:[%s4178_s12 + $0xa8] sm:$0xff]  ;;  %v4215_v11 = vld [vmem:[%s4178_s12 + $0x20] sm:$0xff]  ;;  %s4822_s6 = scalar_lea.vmem [#allocation3], %s3212_s27  ;;  %s4058_s27 = smov [#allocation3]  }
  0x22   : > { %v4194_v7 = vld [vmem:[%s4178_s12 + $0x18] sm:$0xff]  ;;  %3643 = vmatmul.mubr.msk.f32.vlgmr.msra.gmra.mxu0 %vm325_vm1, %v310_v5  ;;  %3661 = vmatmul.mubr.msk.f32.vlgmr.msra.gmra.mxu1 %vm325_vm1, %v4191_v6  ;;  %v4218_v12 = vld [vmem:[%s4178_s12 + $0xb0] sm:$0xff]  ;;  %v541_v14 = vld [vmem:[%s4178_s12 + $0x1] sm:$0xff]  ;;  %s3099_s11 = sshll.u32 %s4822_s6, 4  ;;  %s3968_s30 = sshll.u32 %s4058_s27, 4  ;;  %s4894_s11 = int_to_ptr.vmem [resolvable:$true] %s3099_s11  ;;  %s3969_s30 = int_to_ptr.vmem [resolvable:$false] %s3968_s30 }
  0x23   : > { %3667 = vmatpush3.msk.msra.mxu1 %vm374_vm0, %v3235_v1  ;;  %3693 = vmatpush3.msk.msra.mxu0 %vm374_vm0, %v3253_v2  ;;  %v4225_v13 = vld [vmem:[%s4178_s12 + $0x30] sm:$0xff]  ;;  %v4240_v15 = vld [vmem:[%s4178_s12 + $0x38] sm:$0xff]  ;;  %v4244_v17 = vld [vmem:[%s4178_s12 + $0x48] sm:$0xff]  ;;  %s3964_s23 = scalar_lea.vmem %s4894_s11, 2048  ;;  %s3970_s5 = scalar_lea.vmem %s3969_s30, 4096 }
  0x24   : > { %3645 = vmatprep.mubr.msk.f32.mxu0 %vm325_vm1, %v4194_v7  ;;  %3663 = vmatprep.mubr.msk.f32.mxu1 %vm325_vm1, %v4197_v8  ;;  %v542_v16 = vld [vmem:[%s4178_s12 + $0x9] sm:$0xff]  ;;  %v4247_v18 = vld [vmem:[%s4178_s12 + $0x19] sm:$0xff]  ;;  %v4260_v20 = vld [vmem:[%s4178_s12 + $0x21] sm:$0xff]  ;;  %p3965_p1 = scmp.ne.s32.totalorder %s4894_s11, %s3964_s23  ;;  %p3971_p5 = scmp.lt.s32.totalorder %s4894_s11, %s3969_s30 }
  0x25   : > { %3718 = vmatprep.subr.msk.mxu1 %vm374_vm0, %v4205_v9  ;;  %3746 = vmatprep.subr.msk.mxu0 %vm374_vm0, %v4210_v10  ;;  %v4257_v19 = vld [vmem:[%s4178_s12 + $0x50] sm:$0xff]  ;;  %v4265_v21 = vld [vmem:[%s4178_s12 + $0x60] sm:$0xff]  ;;  %v4281_v23 = vld [vmem:[%s4178_s12 + $0x68] sm:$0xff]  ;;  %p3972_p6 = scmp.lt.s32.totalorder %s3970_s5, %s3964_s23 }
  0x26   : > { %3646 = vmatmul.mubr.msk.f32.gmra.mxu0 %vm325_vm1, %v4215_v11  ;;  %3664 = vmatmul.mubr.msk.f32.gmra.mxu1 %vm325_vm1, %v4218_v12  ;;  %v4268_v22 = vld [vmem:[%s4178_s12 + $0x31] sm:$0xff]  ;;  %v4284_v24 = vld [vmem:[%s4178_s12 + $0x39] sm:$0xff]  ;;  %v4290_v26 = vld [vmem:[%s4178_s12 + $0x49] sm:$0xff]  ;;  %p3966_p2 = pnand %p3965_p1, %p4137_p3 }
  0x27   : > { %3648 = vmatprep.mubr.msk.f32.mxu0 %vm325_vm1, %v4225_v13  ;;  %3668 = vmatprep.mubr.msk.f32.mxu1 %vm325_vm1, %v541_v14  ;;  %v4287_v25 = vld [vmem:[%s4178_s12 + $0x78] sm:$0xff]  ;;  %v4301_v27 = vld [vmem:[%s4178_s12 + $0x80] sm:$0xff]  ;;  %v4318_v31 = vld [vmem:[%s4178_s12 + $0x69] sm:$0xff]  ;;  %p3973_p7 = por %p3972_p6, %p3971_p5 }
  0x28   : > { %v4304_v28 = vld [vmem:[%s4178_s12 + $0x51] sm:$0xff]  ;;  %v4307_v29 = vld [vmem:[%s4178_s12 + $0x61] sm:$0xff]  ;;  %v4322_v33 = vld [vmem:[%s4178_s12 + $0x79] sm:$0xff]  ;;  %p3967_p4 = pneg %p3966_p2 }
  0x29   : > { %v803_v30 = vld [vmem:[%s4178_s12 + $0x2] sm:$0xff]  ;;  %v804_v32 = vld [vmem:[%s4178_s12 + $0xa] sm:$0xff]  ;;  %v4325_v34 = vld [vmem:[%s4178_s12 + $0x1a] sm:$0xff] }
  0x2a   : > { %3649 = vmatmul.mubr.msk.f32.gmra.mxu0 %vm325_vm1, %v4240_v15  ;;  %3669 = vmatmul.mubr.msk.f32.vlgmr.msra.gmra.mxu1 %vm325_vm1, %v542_v16  ;;  %v4335_v35 = vld [vmem:[%s4178_s12 + $0x81] sm:$0xff]  ;;  %v4348_v38 = vld [vmem:[%s4178_s12 + $0x91] sm:$0xff]  ;;  %v4364_v40 = vld [vmem:[%s4178_s12 + $0x99] sm:$0xff]  ;;  %p3974_p9 = pnand %p3973_p7, %p3967_p4 }
  0x2b   : > { %3719 = vmatpush3.msk.msra.mxu1 %vm374_vm0, %v4205_v9  ;;  %3651 = vmatprep.mubr.msk.f32.mxu0 %vm325_vm1, %v4244_v17  ;;  %v4338_v36 = vld [vmem:[%s4178_s12 + $0x22] sm:$0xff]  ;;  %v4351_v39 = vld [vmem:[%s4178_s12 + $0x32] sm:$0xff]  ;;  %v4367_v41 = vld [vmem:[%s4178_s12 + $0x3a] sm:$0xff] }
  0x2c   : > { %3671 = vmatprep.mubr.msk.f32.mxu1 %vm325_vm1, %v4247_v18  ;;  %3741 = vmatprep.subr.msk.mxu1 %vm374_vm0, %v4205_v9  ;;  %v4370_v42 = vld [vmem:[%s4178_s12 + $0xa9] sm:$0xff]  ;;  %v4384_v44 = vld [vmem:[%s4178_s12 + $0xb1] sm:$0xff]  ;;  %v4404_v48 = vld [vmem:[%s4178_s12 + $0x7a] sm:$0xff] }
  0x2d   : > { %v4373_v43 = vld [vmem:[%s4178_s12 + $0x4a] sm:$0xff]  ;;  %v4387_v45 = vld [vmem:[%s4178_s12 + $0x52] sm:$0xff]  ;;  %v4390_v46 = vld [vmem:[%s4178_s12 + $0x62] sm:$0xff] }
  0x2e   : > { %3652 = vmatmul.mubr.msk.f32.gmra.mxu0 %vm325_vm1, %v4257_v19  ;;  %3672 = vmatmul.mubr.msk.f32.gmra.mxu1 %vm325_vm1, %v4260_v20  ;;  %v4401_v47 = vld [vmem:[%s4178_s12 + $0x6a] sm:$0xff]  ;;  %v4415_v49 = vld [vmem:[%s4178_s12 + $0x82] sm:$0xff]  ;;  %v4420_v50 = vld [vmem:[%s4178_s12 + $0x92] sm:$0xff] }
  0x2f   : > { %3654 = vmatprep.mubr.msk.f32.mxu0 %vm325_vm1, %v4265_v21  ;;  %3674 = vmatprep.mubr.msk.f32.mxu1 %vm325_vm1, %v4268_v22  ;;  %v4433_v51 = vld [vmem:[%s4178_s12 + $0x9a] sm:$0xff]  ;;  %v4436_v52 = vld [vmem:[%s4178_s12 + $0xaa] sm:$0xff]  ;;  %v4447_v53 = vld [vmem:[%s4178_s12 + $0xb2] sm:$0xff]  ;;  %s4475_s12 = scalar_lea.vmem %s4956_s1, %s3217_s8  ;;  %s3478_s8 = sshll.u32 %s4040_s18, 4 }
  0x30   : > { %v1302_v55 = vld [vmem:[%s4475_s12] sm:$0xff]  ;;  %v1303_v56 = vld [vmem:[%s4475_s12 + $0x8] sm:$0xff]  ;;  %v2262_v63 = vld [vmem:[%s4475_s12 + $0x18] sm:$0xff]  ;;  %s3096_s18 = sadd.s32 %s3478_s8, %s3467_s9 }
  0x31   : > { %v4495_v57 = vld [vmem:[%s4475_s12 + $0x1] sm:$0xff]  ;;  %v1630_v58 = vld [vmem:[%s4475_s12 + $0x9] sm:$0xff]  ;;  %v2589_v1 = vld [vmem:[%s4475_s12 + $0x19] sm:$0xff]  ;;  %s3468_s19 = sshll.u32 %s3096_s18, 7 }
  0x32   : > { %3655 = vmatmul.mubr.msk.f32.gmra.mxu0 %vm325_vm1, %v4281_v23  ;;  %3675 = vmatmul.mubr.msk.f32.gmra.mxu1 %vm325_vm1, %v4284_v24  ;;  %v4532_v60 = vld [vmem:[%s4475_s12 + $0x2] sm:$0xff]  ;;  %v4544_v61 = vld [vmem:[%s4475_s12 + $0xa] sm:$0xff]  ;;  %v2916_v3 = vld [vmem:[%s4475_s12 + $0x1a] sm:$0xff]  ;;  %s4892_s13 = scalar_lea.hbm %s4959_s4, %s3468_s19 }
  0x33   : > { %3657 = vmatprep.mubr.msk.f32.mxu0 %vm325_vm1, %v4287_v25  ;;  %3677 = vmatprep.mubr.msk.f32.mxu1 %vm325_vm1, %v4290_v26  ;;  %v2263_v0 = vld [vmem:[%s4475_s12 + $0x20] sm:$0xff] }
  0x34   : > { %v2590_v2 = vld [vmem:[%s4475_s12 + $0x21] sm:$0xff] }
  0x36   : > { %3658 = vmatmul.mubr.msk.f32.gmra.mxu0 %vm325_vm1, %v4301_v27  ;;  %3678 = vmatmul.mubr.msk.f32.gmra.mxu1 %vm325_vm1, %v4304_v28 }
  0x37   : > { %3680 = vmatprep.mubr.msk.f32.mxu1 %vm325_vm1, %v4307_v29  ;;  %3694 = vmatprep.mubr.msk.f32.mxu0 %vm325_vm1, %v803_v30 }
  0x3a   : > { %3681 = vmatmul.mubr.msk.f32.gmra.mxu1 %vm325_vm1, %v4318_v31  ;;  %3695 = vmatmul.mubr.msk.f32.vlgmr.msra.gmra.mxu0 %vm325_vm1, %v804_v32 }
  0x3b   : > { %3747 = vmatpush3.msk.msra.mxu0 %vm374_vm0, %v4210_v10  ;;  %3683 = vmatprep.mubr.msk.f32.mxu1 %vm325_vm1, %v4322_v33 }
  0x3c   : > { %3697 = vmatprep.mubr.msk.f32.mxu0 %vm325_vm1, %v4325_v34  ;;  %3797 = vmatprep.subr.msk.mxu0 %vm374_vm0, %v4343_v37 }
  0x3e   : > { %3684 = vmatmul.mubr.msk.f32.gmra.mxu1 %vm325_vm1, %v4335_v35  ;;  %3698 = vmatmul.mubr.msk.f32.gmra.mxu0 %vm325_vm1, %v4338_v36 }
  0x3f   : > { %3686 = vmatprep.mubr.msk.f32.mxu1 %vm325_vm1, %v4348_v38  ;;  %3700 = vmatprep.mubr.msk.f32.mxu0 %vm325_vm1, %v4351_v39 }
  0x42   : > { %3687 = vmatmul.mubr.msk.f32.gmra.mxu1 %vm325_vm1, %v4364_v40  ;;  %3701 = vmatmul.mubr.msk.f32.gmra.mxu0 %vm325_vm1, %v4367_v41 }
  0x43   : > { %3689 = vmatprep.mubr.msk.f32.mxu1 %vm325_vm1, %v4370_v42  ;;  %3703 = vmatprep.mubr.msk.f32.mxu0 %vm325_vm1, %v4373_v43 }
  0x46   : > { %3690 = vmatmul.mubr.msk.f32.gmra.mxu1 %vm325_vm1, %v4384_v44  ;;  %3704 = vmatmul.mubr.msk.f32.gmra.mxu0 %vm325_vm1, %v4387_v45 }
  0x47   : > { %3706 = vmatprep.mubr.msk.f32.mxu0 %vm325_vm1, %v4390_v46  ;;  %3720 = vmatprep.mubr.msk.f32.mxu1 %vm325_vm1, %v4194_v7 }
  0x4a   : > { %3707 = vmatmul.mubr.msk.f32.gmra.mxu0 %vm325_vm1, %v4401_v47  ;;  %3721 = vmatmul.mubr.msk.f32.vlgmr.msra.gmra.mxu1 %vm325_vm1, %v4215_v11 }
  0x4b   : > { %3742 = vmatpush3.msk.msra.mxu1 %vm374_vm0, %v4205_v9  ;;  %3709 = vmatprep.mubr.msk.f32.mxu0 %vm325_vm1, %v4404_v48 }
  0x4c   : > { %3723 = vmatprep.mubr.msk.f32.mxu1 %vm325_vm1, %v4225_v13  ;;  %3769 = vmatprep.subr.msk.mxu1 %vm374_vm0, %v4210_v10 }
  0x4e   : > { %3710 = vmatmul.mubr.msk.f32.gmra.mxu0 %vm325_vm1, %v4415_v49  ;;  %3724 = vmatmul.mubr.msk.f32.gmra.mxu1 %vm325_vm1, %v4240_v15 }
  0x4f   : > { %3712 = vmatprep.mubr.msk.f32.mxu0 %vm325_vm1, %v4420_v50  ;;  %3726 = vmatprep.mubr.msk.f32.mxu1 %vm325_vm1, %v4244_v17 }
  0x52   : > { %3713 = vmatmul.mubr.msk.f32.gmra.mxu0 %vm325_vm1, %v4433_v51  ;;  %3727 = vmatmul.mubr.msk.f32.gmra.mxu1 %vm325_vm1, %v4257_v19 }
  0x53   : > { %3715 = vmatprep.mubr.msk.f32.mxu0 %vm325_vm1, %v4436_v52  ;;  %3729 = vmatprep.mubr.msk.f32.mxu1 %vm325_vm1, %v4265_v21 }
  0x56   : > { %3716 = vmatmul.mubr.msk.f32.gmra.mxu0 %vm325_vm1, %v4447_v53  ;;  %3730 = vmatmul.mubr.msk.f32.gmra.mxu1 %vm325_vm1, %v4281_v23 }
  0x57   : > { %3732 = vmatprep.mubr.msk.f32.mxu1 %vm325_vm1, %v4287_v25  ;;  %3748 = vmatprep.mubr.msk.f32.mxu0 %vm325_vm1, %v4247_v18 }
  0x5a   : > { %3733 = vmatmul.mubr.msk.f32.gmra.mxu1 %vm325_vm1, %v4301_v27  ;;  %3749 = vmatmul.mubr.msk.f32.vlgmr.msra.gmra.mxu0 %vm325_vm1, %v4260_v20 }
  0x5b   : > { %3798 = vmatpush3.msk.msra.mxu0 %vm374_vm0, %v4343_v37  ;;  %3735 = vmatprep.mubr.msk.f32.mxu1 %vm325_vm1, %v4182_v4 }
  0x5c   : > { %3751 = vmatprep.mubr.msk.f32.mxu0 %vm325_vm1, %v4268_v22  ;;  %3802 = vmatprep.subr.msk.mxu0 %vm374_vm0, %v3370_v54 }
  0x5e   : > { %3736 = vmatmul.mubr.msk.f32.gmra.mxu1 %vm325_vm1, %v4191_v6  ;;  %3752 = vmatmul.mubr.msk.f32.gmra.mxu0 %vm325_vm1, %v4284_v24 }
  0x5f   : > { %3738 = vmatprep.mubr.msk.f32.mxu1 %vm325_vm1, %v4197_v8  ;;  %3754 = vmatprep.mubr.msk.f32.mxu0 %vm325_vm1, %v4290_v26 }
  0x62   : > { %3739 = vmatmul.mubr.msk.f32.gmra.mxu1 %vm325_vm1, %v4218_v12  ;;  %3755 = vmatmul.mubr.msk.f32.gmra.mxu0 %vm325_vm1, %v4304_v28 }
  0x63   : > { %3743 = vmatprep.mubr.msk.f32.mxu1 %vm325_vm1, %v1302_v55  ;;  %3757 = vmatprep.mubr.msk.f32.mxu0 %vm325_vm1, %v4307_v29 }
  0x66   : > { %3744 = vmatmul.mubr.msk.f32.vlgmr.msra.gmra.mxu1 %vm325_vm1, %v1303_v56  ;;  %3758 = vmatmul.mubr.msk.f32.gmra.mxu0 %vm325_vm1, %v4318_v31 }
  0x67   : > { %3770 = vmatpush3.msk.msra.mxu1 %vm374_vm0, %v4210_v10  ;;  %3760 = vmatprep.mubr.msk.f32.mxu0 %vm325_vm1, %v4322_v33 }
  0x68   : > { %3771 = vmatprep.mubr.msk.f32.mxu1 %vm325_vm1, %v4495_v57  ;;  %3774 = vmatprep.subr.msk.mxu1 %vm374_vm0, %v4343_v37 }
  0x6a   : > { %3761 = vmatmul.mubr.msk.f32.gmra.mxu0 %vm325_vm1, %v4335_v35  ;;  %3772 = vmatmul.mubr.msk.f32.vlgmr.msra.gmra.mxu1 %vm325_vm1, %v1630_v58 }
  0x6b   : > { %3775 = vmatpush3.msk.msra.mxu1 %vm374_vm0, %v4343_v37  ;;  %3763 = vmatprep.mubr.msk.f32.mxu0 %vm325_vm1, %v4348_v38 }
  0x6c   : > { %3776 = vmatprep.mubr.msk.f32.mxu1 %vm325_vm1, %v4325_v34  ;;  %3822 = vmatprep.subr.msk.mxu1 %vm374_vm0, %v3370_v54 }
  0x6e   : > { %3764 = vmatmul.mubr.msk.f32.gmra.mxu0 %vm325_vm1, %v4364_v40  ;;  %3777 = vmatmul.mubr.msk.f32.vlgmr.msra.gmra.mxu1 %vm325_vm1, %v4338_v36 }
  0x6f   : > { %3823 = vmatpush3.msk.msra.mxu1 %vm374_vm0, %v3370_v54  ;;  %3766 = vmatprep.mubr.msk.f32.mxu0 %vm325_vm1, %v4370_v42 }
  0x70   : > { %3779 = vmatprep.mubr.msk.f32.mxu1 %vm325_vm1, %v4351_v39  ;;  %3830 = vmatprep.subr.msk.mxu1 %vm374_vm0, %v3401_v59 }
  0x72   : > { %3767 = vmatmul.mubr.msk.f32.gmra.mxu0 %vm325_vm1, %v4384_v44  ;;  %3780 = vmatmul.mubr.msk.f32.gmra.mxu1 %vm325_vm1, %v4367_v41 }
  0x73   : > { %3782 = vmatprep.mubr.msk.f32.mxu1 %vm325_vm1, %v4373_v43  ;;  %3799 = vmatprep.mubr.msk.f32.mxu0 %vm325_vm1, %v4532_v60 }
  0x76   : > { %3783 = vmatmul.mubr.msk.f32.gmra.mxu1 %vm325_vm1, %v4387_v45  ;;  %3800 = vmatmul.mubr.msk.f32.vlgmr.msra.gmra.mxu0 %vm325_vm1, %v4544_v61 }
  0x77   : > { %3803 = vmatpush3.msk.msra.mxu0 %vm374_vm0, %v3370_v54  ;;  %3785 = vmatprep.mubr.msk.f32.mxu1 %vm325_vm1, %v4390_v46 }
  0x78   : > { %3804 = vmatprep.mubr.msk.f32.mxu0 %vm325_vm1, %v4225_v13  ;;  %3850 = vmatprep.subr.msk.mxu0 %vm374_vm0, %v3401_v59 }
  0x7a   : > { %3786 = vmatmul.mubr.msk.f32.gmra.mxu1 %vm325_vm1, %v4401_v47  ;;  %3805 = vmatmul.mubr.msk.f32.vlgmr.msra.gmra.mxu0 %vm325_vm1, %v4240_v15 }
  0x7b   : > { %3851 = vmatpush3.msk.msra.mxu0 %vm374_vm0, %v3401_v59  ;;  %3788 = vmatprep.mubr.msk.f32.mxu1 %vm325_vm1, %v4404_v48 }
  0x7c   : > { %3807 = vmatprep.mubr.msk.f32.mxu0 %vm325_vm1, %v4244_v17  ;;  %3858 = vmatprep.subr.msk.mxu0 %vm374_vm0, %v3432_v62 }
  0x7e   : > { %3789 = vmatmul.mubr.msk.f32.gmra.mxu1 %vm325_vm1, %v4415_v49  ;;  %3808 = vmatmul.mubr.msk.f32.gmra.mxu0 %vm325_vm1, %v4257_v19 }
  0x7f   : > { %3791 = vmatprep.mubr.msk.f32.mxu1 %vm325_vm1, %v4420_v50  ;;  %3810 = vmatprep.mubr.msk.f32.mxu0 %vm325_vm1, %v4265_v21 }
  0x82   : > { %3792 = vmatmul.mubr.msk.f32.gmra.mxu1 %vm325_vm1, %v4433_v51  ;;  %3811 = vmatmul.mubr.msk.f32.gmra.mxu0 %vm325_vm1, %v4281_v23 }
  0x83   : > { %3794 = vmatprep.mubr.msk.f32.mxu1 %vm325_vm1, %v4436_v52  ;;  %3813 = vmatprep.mubr.msk.f32.mxu0 %vm325_vm1, %v4287_v25 }
  0x86   : > { %3795 = vmatmul.mubr.msk.f32.gmra.mxu1 %vm325_vm1, %v4447_v53  ;;  %3814 = vmatmul.mubr.msk.f32.gmra.mxu0 %vm325_vm1, %v4301_v27 }
  0x87   : > { %3816 = vmatprep.mubr.msk.f32.mxu0 %vm325_vm1, %v4182_v4  ;;  %3824 = vmatprep.mubr.msk.f32.mxu1 %vm325_vm1, %v1302_v55  ;;  %v2917_v4 = vld [vmem:[%s4475_s12 + $0x22] sm:$0xff] }
  0x8a   : > { %3817 = vmatmul.mubr.msk.f32.gmra.mxu0 %vm325_vm1, %v4191_v6  ;;  %3825 = vmatmul.mubr.msk.f32.vlgmr.msra.gmra.mxu1 %vm325_vm1, %v1303_v56 }
  0x8b   : > { %3831 = vmatpush3.msk.msra.mxu1 %vm374_vm0, %v3401_v59  ;;  %3819 = vmatprep.mubr.msk.f32.mxu0 %vm325_vm1, %v4197_v8 }
  0x8c   : > { %3827 = vmatprep.mubr.msk.f32.mxu1 %vm325_vm1, %v2262_v63  ;;  %3878 = vmatprep.subr.msk.mxu1 %vm374_vm0, %v3432_v62 }
  0x8e   : > { %3820 = vmatmul.mubr.msk.f32.gmra.mxu0 %vm325_vm1, %v4218_v12  ;;  %3828 = vmatmul.mubr.msk.f32.gmra.mxu1 %vm325_vm1, %v2263_v0 }
  0x8f   : > { %3832 = vmatprep.mubr.msk.f32.mxu1 %vm325_vm1, %v4268_v22  ;;  %3852 = vmatprep.mubr.msk.f32.mxu0 %vm325_vm1, %v4495_v57 }
  0x92   : > { %3833 = vmatmul.mubr.msk.f32.vlgmr.msra.gmra.mxu1 %vm325_vm1, %v4284_v24  ;;  %3853 = vmatmul.mubr.msk.f32.vlgmr.msra.gmra.mxu0 %vm325_vm1, %v1630_v58 }
  0x93   : > { %3859 = vmatpush3.msk.msra.mxu0 %vm374_vm0, %v3432_v62  ;;  %3879 = vmatpush3.msk.msra.mxu1 %vm374_vm0, %v3432_v62 }
  0x94   : > { %3835 = vmatprep.mubr.msk.f32.mxu1 %vm325_vm1, %v4290_v26  ;;  %3855 = vmatprep.mubr.msk.f32.mxu0 %vm325_vm1, %v2589_v1 }
  0x96   : > { %3836 = vmatmul.mubr.msk.f32.gmra.mxu1 %vm325_vm1, %v4304_v28  ;;  %3856 = vmatmul.mubr.msk.f32.gmra.mxu0 %vm325_vm1, %v2590_v2 }
  0x97   : > { %3838 = vmatprep.mubr.msk.f32.mxu1 %vm325_vm1, %v4307_v29  ;;  %3860 = vmatprep.mubr.msk.f32.mxu0 %vm325_vm1, %v4351_v39 }
  0x9a   : > { %3839 = vmatmul.mubr.msk.f32.gmra.mxu1 %vm325_vm1, %v4318_v31  ;;  %3861 = vmatmul.mubr.msk.f32.vlgmr.msra.gmra.mxu0 %vm325_vm1, %v4367_v41 }
  0x9b   : > { %3841 = vmatprep.mubr.msk.f32.mxu1 %vm325_vm1, %v4322_v33  ;;  %3863 = vmatprep.mubr.msk.f32.mxu0 %vm325_vm1, %v4373_v43 }
  0x9e   : > { %3842 = vmatmul.mubr.msk.f32.gmra.mxu1 %vm325_vm1, %v4335_v35  ;;  %3864 = vmatmul.mubr.msk.f32.gmra.mxu0 %vm325_vm1, %v4387_v45 }
  0x9f   : > { %3844 = vmatprep.mubr.msk.f32.mxu1 %vm325_vm1, %v4348_v38  ;;  %3866 = vmatprep.mubr.msk.f32.mxu0 %vm325_vm1, %v4390_v46 }
  0xa2   : > { %3845 = vmatmul.mubr.msk.f32.gmra.mxu1 %vm325_vm1, %v4364_v40  ;;  %3867 = vmatmul.mubr.msk.f32.gmra.mxu0 %vm325_vm1, %v4401_v47 }
  0xa3   : > { %3847 = vmatprep.mubr.msk.f32.mxu1 %vm325_vm1, %v4370_v42  ;;  %3869 = vmatprep.mubr.msk.f32.mxu0 %vm325_vm1, %v4404_v48 }
  0xa6   : > { %3848 = vmatmul.mubr.msk.f32.gmra.mxu1 %vm325_vm1, %v4384_v44  ;;  %3870 = vmatmul.mubr.msk.f32.gmra.mxu0 %vm325_vm1, %v4415_v49 }
  0xa7   : > { %3872 = vmatprep.mubr.msk.f32.mxu0 %vm325_vm1, %v4420_v50  ;;  %3880 = vmatprep.mubr.msk.f32.mxu1 %vm325_vm1, %v4532_v60 }
  0xaa   : > { %3873 = vmatmul.mubr.msk.f32.gmra.mxu0 %vm325_vm1, %v4433_v51  ;;  %3881 = vmatmul.mubr.msk.f32.vlgmr.msra.gmra.mxu1 %vm325_vm1, %v4544_v61 }
  0xab   : > { %3875 = vmatprep.mubr.msk.f32.mxu0 %vm325_vm1, %v4436_v52  ;;  %3883 = vmatprep.mubr.msk.f32.mxu1 %vm325_vm1, %v2916_v3 }
  0xae   : > { %3876 = vmatmul.mubr.msk.f32.gmra.mxu0 %vm325_vm1, %v4447_v53  ;;  %3884 = vmatmul.mubr.msk.f32.gmra.mxu1 %vm325_vm1, %v2917_v4 }
  0xe2   : > { %v3644_v5 = vpop.f32.mrf.mxu0  ;;  %v3662_v6 = vpop.f32.mrf.mxu1 }
  0xe4   : > { %v444_v7 = vpop.f32.mrf.mxu0  ;;  %v504_v8 = vpop.f32.mrf.mxu1 }
  0xe6   : > { %v3647_v9 = vpop.f32.mrf.mxu0  ;;  %v3665_v10 = vpop.f32.mrf.mxu1 }
  0xe8   : > { %v454_v11 = vpop.f32.mrf.mxu0  ;;  %v514_v12 = vpop.f32.mrf.mxu1 }
  0xea   : > { %v3650_v13 = vpop.f32.mrf.mxu0  ;;  %v3670_v14 = vpop.f32.mrf.mxu1 }
  0xeb   : > { %v770_v15 = vadd.f32 %v3670_v14, %v3644_v5 }
  0xec   : > { %v464_v16 = vpop.f32.mrf.mxu0  ;;  %v674_v17 = vpop.f32.mrf.mxu1 }
  0xed   : > { %v769_v18 = vadd.f32 %v674_v17, %v444_v7 }
  0xee   : > { %v3653_v19 = vpop.f32.mrf.mxu0  ;;  %v3673_v20 = vpop.f32.mrf.mxu1 }
  0xef   : > { %v772_v21 = vadd.f32 %v3673_v20, %v3647_v9 }
  0xf0   : > { %v474_v22 = vpop.f32.mrf.mxu0  ;;  %v684_v23 = vpop.f32.mrf.mxu1 }
  0xf1   : > { %v771_v24 = vadd.f32 %v684_v23, %v454_v11 }
  0xf2   : > { %v3656_v25 = vpop.f32.mrf.mxu0  ;;  %v3676_v26 = vpop.f32.mrf.mxu1 }
  0xf3   : > { %v774_v27 = vadd.f32 %v3676_v26, %v3650_v13 }
  0xf4   : > { %v484_v28 = vpop.f32.mrf.mxu0  ;;  %v694_v29 = vpop.f32.mrf.mxu1 }
  0xf5   : > { %v773_v30 = vadd.f32 %v694_v29, %v464_v16 }
  0xf6   : > { %v3659_v31 = vpop.f32.mrf.mxu0  ;;  %v3679_v32 = vpop.f32.mrf.mxu1 }
  0xf7   : > { %v776_v33 = vadd.f32 %v3679_v32, %v3653_v19 }
  0xf8   : > { %v494_v34 = vpop.f32.mrf.mxu0  ;;  %v704_v35 = vpop.f32.mrf.mxu1 }
  0xf9   : > { %v775_v36 = vadd.f32 %v704_v35, %v474_v22 }
  0xfa   : > { %v3682_v37 = vpop.f32.mrf.mxu1  ;;  %v3696_v38 = vpop.f32.mrf.mxu0 }
  0xfb   : > { %v778_v39 = vadd.f32 %v3682_v37, %v3656_v25  ;;  %v1032_v40 = vadd.f32 %v3696_v38, %v770_v15 }
  0xfc   : > { %v714_v41 = vpop.f32.mrf.mxu1  ;;  %v936_v42 = vpop.f32.mrf.mxu0 }
  0xfd   : > { %v777_v43 = vadd.f32 %v714_v41, %v484_v28  ;;  %v1031_v44 = vadd.f32 %v936_v42, %v769_v18 }
  0xfe   : > { %v3685_v45 = vpop.f32.mrf.mxu1  ;;  %v3699_v46 = vpop.f32.mrf.mxu0 }
  0xff   : > { %v780_v47 = vadd.f32 %v3685_v45, %v3659_v31  ;;  %v1034_v48 = vadd.f32 %v3699_v46, %v772_v21 }
 0x100   : > { %v724_v49 = vpop.f32.mrf.mxu1  ;;  %v946_v50 = vpop.f32.mrf.mxu0 }
 0x101   : > { %v779_v51 = vadd.f32 %v724_v49, %v494_v34  ;;  %v1033_v52 = vadd.f32 %v946_v50, %v771_v24 }
 0x102   : > { %v3688_v53 = vpop.f32.mrf.mxu1  ;;  %v3702_v54 = vpop.f32.mrf.mxu0 }
 0x103   : > { %v782_v55 = vadd.f32 %v3688_v53, %v3662_v6  ;;  %v1036_v56 = vadd.f32 %v3702_v54, %v774_v27 }
 0x104   : > { %v734_v57 = vpop.f32.mrf.mxu1  ;;  %v956_v58 = vpop.f32.mrf.mxu0 }
 0x105   : > { %v781_v59 = vadd.f32 %v734_v57, %v504_v8  ;;  %v1035_v60 = vadd.f32 %v956_v58, %v773_v30 }
 0x106   : > { %v3691_v61 = vpop.f32.mrf.mxu1  ;;  %v3705_v62 = vpop.f32.mrf.mxu0 }
 0x107   : > { %v784_v63 = vadd.f32 %v3691_v61, %v3665_v10  ;;  %v1038_v0 = vadd.f32 %v3705_v62, %v776_v33 }
 0x108   : > { %v744_v1 = vpop.f32.mrf.mxu1  ;;  %v966_v2 = vpop.f32.mrf.mxu0 }
 0x109   : > { %v783_v3 = vadd.f32 %v744_v1, %v514_v12  ;;  %v1037_v4 = vadd.f32 %v966_v2, %v775_v36 }
 0x10a   : > { %v3708_v5 = vpop.f32.mrf.mxu0  ;;  %v3722_v7 = vpop.f32.mrf.mxu1 }
 0x10b   : > { %v1040_v9 = vadd.f32 %v3708_v5, %v778_v39  ;;  %v4670_v11 = vadd.f32 %v3722_v7, %v1032_v40 }
 0x10c   : > { %v976_v13 = vpop.f32.mrf.mxu0  ;;  %v1191_v6 = vpop.f32.mrf.mxu1 }
 0x10d   : > { %v1039_v14 = vadd.f32 %v976_v13, %v777_v43  ;;  %v4672_v15 = vadd.f32 %v1191_v6, %v1031_v44 }
 0x10e   : > { %v3711_v8 = vpop.f32.mrf.mxu0  ;;  %v3725_v16 = vpop.f32.mrf.mxu1 }
 0x10f   : > { %v1042_v17 = vadd.f32 %v3711_v8, %v780_v47  ;;  %v4674_v18 = vadd.f32 %v3725_v16, %v1034_v48 }
 0x110   : > { %v986_v10 = vpop.f32.mrf.mxu0  ;;  %v1201_v19 = vpop.f32.mrf.mxu1 }
 0x111   : > { %v1041_v20 = vadd.f32 %v986_v10, %v779_v51  ;;  %v4676_v12 = vadd.f32 %v1201_v19, %v1033_v52 }
 0x112   : > { %v3714_v21 = vpop.f32.mrf.mxu0  ;;  %v3728_v22 = vpop.f32.mrf.mxu1 }
 0x113   : > { %v4678_v23 = vadd.f32 %v3714_v21, %v782_v55  ;;  %v4680_v24 = vadd.f32 %v3728_v22, %v1036_v56 }
 0x114   : > { %v996_v25 = vpop.f32.mrf.mxu0  ;;  %v1211_v26 = vpop.f32.mrf.mxu1 }
 0x115   : > { %v4682_v27 = vadd.f32 %v996_v25, %v781_v59  ;;  %v4684_v28 = vadd.f32 %v1211_v26, %v1035_v60 }
 0x116   : > { %v3717_v29 = vpop.f32.mrf.mxu0  ;;  %v3731_v30 = vpop.f32.mrf.mxu1 }
 0x117   : > { %v4686_v31 = vadd.f32 %v3717_v29, %v784_v63  ;;  %v4688_v32 = vadd.f32 %v3731_v30, %v1038_v0 }
 0x118   : > { %v1006_v33 = vpop.f32.mrf.mxu0  ;;  %v1221_v34 = vpop.f32.mrf.mxu1 }
 0x119   : > { %v4690_v35 = vadd.f32 %v1006_v33, %v783_v3  ;;  %v4692_v36 = vadd.f32 %v1221_v34, %v1037_v4 }
 0x11a   : > { %v3734_v37 = vpop.f32.mrf.mxu1  ;;  %v3750_v38 = vpop.f32.mrf.mxu0 }
 0x11b   : > { %v4694_v39 = vadd.f32 %v3734_v37, %v1040_v9 }
 0x11c   : > { %v1231_v40 = vpop.f32.mrf.mxu1  ;;  %v1518_v41 = vpop.f32.mrf.mxu0 }
 0x11d   : > { %v4696_v42 = vadd.f32 %v1231_v40, %v1039_v14 }
 0x11e   : > { %v3737_v43 = vpop.f32.mrf.mxu1  ;;  %v4698_v44 = vpop.f32.mrf.mxu0 }
 0x11f   : > { %v4700_v45 = vadd.f32 %v3737_v43, %v1042_v17 }
 0x120   : > { %v1241_v46 = vpop.f32.mrf.mxu1  ;;  %v4702_v47 = vpop.f32.mrf.mxu0 }
 0x121   : > { %v4704_v48 = vadd.f32 %v1241_v46, %v1041_v20 }
 0x122   : > { %v4706_v49 = vpop.f32.mrf.mxu1  ;;  %v4708_v50 = vpop.f32.mrf.mxu0 }
 0x124   : > { %v4710_v51 = vpop.f32.mrf.mxu1  ;;  %v4712_v52 = vpop.f32.mrf.mxu0 }
 0x126   : > { %v4714_v53 = vpop.f32.mrf.mxu1  ;;  %v4716_v54 = vpop.f32.mrf.mxu0 }
 0x128   : > { %v4718_v55 = vpop.f32.mrf.mxu1  ;;  %v4720_v56 = vpop.f32.mrf.mxu0 }
 0x12a   : > { %v4722_v57 = vpop.f32.mrf.mxu0  ;;  %v4724_v58 = vpop.f32.mrf.mxu1 }
 0x12c   : > { %v4726_v59 = vpop.f32.mrf.mxu0  ;;  %v4728_v60 = vpop.f32.mrf.mxu1 }
 0x12e   : > { %v4730_v61 = vpop.f32.mrf.mxu0  ;;  %v3778_v62 = vpop.f32.mrf.mxu1 }
 0x130   : > { %v4732_v63 = vpop.f32.mrf.mxu0  ;;  %v1845_v0 = vpop.f32.mrf.mxu1 }
 0x132   : > { %v4734_v1 = vpop.f32.mrf.mxu0  ;;  %v3781_v2 = vpop.f32.mrf.mxu1 }
 0x134   : > { %v4736_v3 = vpop.f32.mrf.mxu0  ;;  %v1855_v4 = vpop.f32.mrf.mxu1 }
 0x135   : > { %4962 = vst [vmem:[#allocation6_spill] sm:$0xff] %v4736_v3 }
 0x136   : > { %v3784_v5 = vpop.f32.mrf.mxu1  ;;  %v4738_v7 = vpop.f32.mrf.mxu0 }
 0x137   : > { %4963 = vst [vmem:[#allocation7_spill] sm:$0xff] %v4738_v7 }
 0x138   : > { %v4740_v9 = vpop.f32.mrf.mxu1  ;;  %v4742_v13 = vpop.f32.mrf.mxu0 }
 0x139   : > { %4964 = vst [vmem:[#allocation8_spill] sm:$0xff] %v4742_v13 }
 0x13a   : > { %v4744_v6 = vpop.f32.mrf.mxu1  ;;  %v3806_v14 = vpop.f32.mrf.mxu0 }
 0x13c   : > { %v4746_v8 = vpop.f32.mrf.mxu1  ;;  %v2165_v16 = vpop.f32.mrf.mxu0 }
 0x13e   : > { %v4748_v17 = vpop.f32.mrf.mxu1  ;;  %v3809_v10 = vpop.f32.mrf.mxu0 }
 0x13f   : > { %4965 = vst [vmem:[#allocation9_spill] sm:$0xff] %v4748_v17 }
 0x140   : > { %v4750_v19 = vpop.f32.mrf.mxu1  ;;  %v2175_v20 = vpop.f32.mrf.mxu0 }
 0x141   : > { %4966 = vst [vmem:[#allocation10_spill] sm:$0xff] %v4750_v19 }
 0x142   : > { %v4752_v21 = vpop.f32.mrf.mxu1  ;;  %v3812_v22 = vpop.f32.mrf.mxu0 }
 0x143   : > { %4967 = vst [vmem:[#allocation11_spill] sm:$0xff] %v4752_v21 }
 0x144   : > { %v4754_v25 = vpop.f32.mrf.mxu1  ;;  %v4756_v26 = vpop.f32.mrf.mxu0 }
 0x145   : > { %4968 = vst [vmem:[#allocation12_spill] sm:$0xff] %v4754_v25 }
 0x146   : > { %v4758_v29 = vpop.f32.mrf.mxu1  ;;  %v4760_v30 = vpop.f32.mrf.mxu0 }
 0x147   : > { %4969 = vst [vmem:[#allocation13_spill] sm:$0xff] %v4758_v29 }
 0x148   : > { %v4762_v33 = vpop.f32.mrf.mxu1  ;;  %v4764_v34 = vpop.f32.mrf.mxu0 }
 0x149   : > { %4970 = vst [vmem:[#allocation14_spill] sm:$0xff] %v4762_v33  ;;  %4971 = vst [vmem:[#allocation15_spill] sm:$0xff] %v4764_v34 }
 0x14a   : > { %v4766_v37 = vpop.f32.mrf.mxu0  ;;  %v4768_v40 = vpop.f32.mrf.mxu1 }
 0x14b   : > { %4972 = vst [vmem:[#allocation16_spill] sm:$0xff] %v4766_v37  ;;  %4973 = vst [vmem:[#allocation17_spill] sm:$0xff] %v4768_v40  ;;  %v1602_v37 = vadd.f32 %v3750_v38, %v4670_v11  ;;  %v1603_v11 = vadd.f32 %v4702_v47, %v4676_v12 }
 0x14c   : > { %v4770_v43 = vpop.f32.mrf.mxu0  ;;  %v4772_v46 = vpop.f32.mrf.mxu1 }
 0x14d   : > { %4974 = vst [vmem:[#allocation18_spill] sm:$0xff] %v4770_v43  ;;  %4975 = vst [vmem:[#allocation19_spill] sm:$0xff] %v4772_v46  ;;  %v1601_v43 = vadd.f32 %v1518_v41, %v4672_v15  ;;  %v1929_v46 = vadd.f32 %v3778_v62, %v1602_v37  ;;  %v1287_v15 = vadd.f32 %v4706_v49, %v4678_v23  ;;  %v4806_v62 = vld [vmem:[%s4958_s3] ss:$0 sm:$0xff] }
 0x14e   : > { %v4774_v25 = vpop.f32.mrf.mxu0  ;;  %v4776_v21 = vpop.f32.mrf.mxu1  ;;  %v1606_v41 = vadd.f32 %v4708_v50, %v4680_v24  ;;  %v1605_v23 = vadd.f32 %v4712_v52, %v4684_v28  ;;  %v1388_v24 = vadd.f32 %v4714_v53, %v4686_v31  ;;  %v1607_v28 = vadd.f32 %v4720_v56, %v4692_v36 }
 0x14f   : > { %4976 = vst [vmem:[#allocation20_spill] sm:$0xff] %v4774_v25  ;;  %4977 = vst [vmem:[#allocation21_spill] sm:$0xff] %v4776_v21  ;;  %v2237_v21 = vadd.f32 %v3806_v14, %v1929_v46  ;;  %v1609_v36 = vadd.f32 %v4726_v59, %v4696_v42 }
 0x150   : > { %v4778_v13 = vpop.f32.mrf.mxu0  ;;  %v4780_v19 = vpop.f32.mrf.mxu1  ;;  %v1933_v49 = vadd.f32 %v3784_v5, %v1606_v41  ;;  %v1934_v42 = vadd.f32 %v4746_v8, %v1607_v28 }
 0x151   : > { %4978 = vst [vmem:[#allocation22_spill] sm:$0xff] %v4778_v13  ;;  %4979 = vst [vmem:[#allocation23_spill] sm:$0xff] %v4780_v19  ;;  %v1604_v13 = vadd.f32 %v4698_v44, %v4674_v18  ;;  %v1928_v19 = vadd.f32 %v1845_v0, %v1601_v43  ;;  %v1930_v0 = vadd.f32 %v1855_v4, %v1603_v11 }
 0x152   : > { %v3834_v33 = vpop.f32.mrf.mxu1  ;;  %v4782_v7 = vpop.f32.mrf.mxu0  ;;  %v2241_v53 = vadd.f32 %v3812_v22, %v1933_v49  ;;  %v4990_v49 = vld [vmem:[#allocation17_spill] sm:$0xff] }
 0x153   : > { %4980 = vst [vmem:[#allocation24_spill] sm:$0xff] %v4782_v7  ;;  %v1931_v38 = vadd.f32 %v3781_v2, %v1604_v13  ;;  %v2564_v3 = vadd.f32 %v3834_v33, %v2237_v21  ;;  %v1286_v13 = vadd.f32 %v4710_v51, %v4682_v27  ;;  %v1387_v27 = vadd.f32 %v4718_v55, %v4690_v35 }
 0x154   : > { %v2492_v34 = vpop.f32.mrf.mxu1  ;;  %v4785_v40 = vpop.f32.mrf.mxu0  ;;  %v1932_v51 = vadd.f32 %v4740_v9, %v1605_v23  ;;  %v1610_v35 = vadd.f32 %v4722_v57, %v4694_v39  ;;  %v1612_v39 = vadd.f32 %v4730_v61, %v4700_v45  ;;  %v1614_v57 = vadd.f32 %v4734_v1, %v1287_v15  ;;  %v4983_v45 = vld [vmem:[#allocation9_spill] sm:$0xff]  ;;  %v4993_v28 = vld [vmem:[#allocation18_spill] sm:$0xff] }
 0x155   : > { %4981 = vst [vmem:[#allocation25_spill] sm:$0xff] %v4785_v40  ;;  %v2236_v40 = vadd.f32 %v2165_v16, %v1928_v19  ;;  %v2239_v12 = vadd.f32 %v3809_v10, %v1931_v38  ;;  %v2238_v16 = vadd.f32 %v2175_v20, %v1930_v0  ;;  %v1714_v33 = vadd.f32 %v4728_v60, %v1387_v27  ;;  %v4984_v1 = vld [vmem:[#allocation13_spill] sm:$0xff]  ;;  %v4985_v38 = vld [vmem:[#allocation15_spill] sm:$0xff] }
 0x156   : > { %v3837_v29 = vpop.f32.mrf.mxu1  ;;  %v4788_v25 = vpop.f32.mrf.mxu0  ;;  %v1611_v60 = vadd.f32 %v4732_v63, %v4704_v48  ;;  %v1937_v61 = vadd.f32 %v4983_v45, %v1610_v35  ;;  %v1941_v46 = vadd.f32 %v4984_v1, %v1614_v57  ;;  %v2242_v15 = vadd.f32 %v4985_v38, %v1934_v42  ;;  %v4988_v63 = vld [vmem:[#allocation14_spill] sm:$0xff] }
 0x157   : > { %v2563_v47 = vadd.f32 %v2492_v34, %v2236_v40  ;;  %v2566_v19 = vadd.f32 %v3837_v29, %v2239_v12  ;;  %v4982_v40 = vld [vmem:[#allocation6_spill] sm:$0xff] }
 0x158   : > { %v2502_v17 = vpop.f32.mrf.mxu1  ;;  %v4793_v7 = vpop.f32.mrf.mxu0  ;;  %v1613_v43 = vadd.f32 %v4982_v40, %v1286_v13  ;;  %v4987_v12 = vld [vmem:[#allocation10_spill] sm:$0xff] }
 0x159   : > { %v2565_v5 = vadd.f32 %v2502_v17, %v2238_v16  ;;  %v2240_v17 = vadd.f32 %v4756_v26, %v1932_v51  ;;  %v1936_v48 = vadd.f32 %v4987_v12, %v1609_v36 }
 0x15a   : > { %v3840_v18 = vpop.f32.mrf.mxu1  ;;  %v3862_v44 = vpop.f32.mrf.mxu0 }
 0x15b   : > { %v2891_v2 = vadd.f32 %v3862_v44, %v2564_v3  ;;  %v1608_v3 = vadd.f32 %v4716_v54, %v4688_v32  ;;  %v1715_v54 = vadd.f32 %v4724_v58, %v1388_v24  ;;  %v2568_v20 = vadd.f32 %v3840_v18, %v2241_v53  ;;  %v4986_v44 = vld [vmem:[#allocation7_spill] sm:$0xff] }
 0x15c   : > { %v2512_v50 = vpop.f32.mrf.mxu1  ;;  %v2819_v14 = vpop.f32.mrf.mxu0  ;;  %v2244_v51 = vadd.f32 %v4993_v28, %v1936_v48 }
 0x15d   : > { %v3051_v21 = vadd.f32 %v4806_v62, %v2891_v2  ;;  %v2890_v4 = vadd.f32 %v2819_v14, %v2563_v47  ;;  %v1935_v55 = vadd.f32 %v4744_v6, %v1608_v3  ;;  %v2567_v26 = vadd.f32 %v2512_v50, %v2240_v17  ;;  %v4989_v2 = vld [vmem:[#allocation16_spill] sm:$0xff]  ;;  %v4992_v3 = vld [vmem:[#allocation11_spill] sm:$0xff] }
 0x15e   : > { %v3843_v31 = vpop.f32.mrf.mxu1  ;;  %v3865_v52 = vpop.f32.mrf.mxu0  ;;  %v2042_v0 = vadd.f32 %v4986_v44, %v1715_v54  ;;  %v1940_v47 = vadd.f32 %v4988_v63, %v1613_v43  ;;  %v2245_v13 = vadd.f32 %v4989_v2, %v1937_v61  ;;  %v2366_v50 = vadd.f32 %v4990_v49, %v1941_v46 }
 0x15f   : > { %3067 = vst [vmem:[%s4822_s6 + $0x8] sm:$0xff] %v3051_v21  ;;  %v3050_v10 = vadd.f32 %v4806_v62, %v2890_v4  ;;  %v2893_v32 = vadd.f32 %v3865_v52, %v2566_v19  ;;  %v2243_v6 = vadd.f32 %v4760_v30, %v1935_v55  ;;  %v4991_v21 = vld [vmem:[#allocation8_spill] sm:$0xff]  ;;  %v1939_v27 = vadd.f32 %v4992_v3, %v1612_v39 }
 0x160   : > { %v2522_v56 = vpop.f32.mrf.mxu1  ;;  %v2829_v9 = vpop.f32.mrf.mxu0  ;;  %v2041_v4 = vadd.f32 %v4991_v21, %v1714_v33  ;;  %v4996_v55 = vld [vmem:[#allocation12_spill] sm:$0xff] }
 0x161   : > { %3066 = vst [vmem:[%s4822_s6] sm:$0xff] %v3050_v10  ;;  %v3053_v22 = vadd.f32 %v4806_v62, %v2893_v32  ;;  %v2892_v29 = vadd.f32 %v2829_v9, %v2565_v5  ;;  %v2570_v30 = vadd.f32 %v3843_v31, %v2243_v6  ;;  %v2569_v14 = vadd.f32 %v2522_v56, %v2242_v15  ;;  %v4994_v31 = vld [vmem:[#allocation19_spill] sm:$0xff]  ;;  %v4995_v10 = vld [vmem:[#allocation24_spill] sm:$0xff] }
 0x162   : > { %v3846_v58 = vpop.f32.mrf.mxu1  ;;  %v3868_v59 = vpop.f32.mrf.mxu0  ;;  %v2365_v52 = vadd.f32 %v4994_v31, %v1940_v47  ;;  %v2693_v32 = vadd.f32 %v4995_v10, %v2366_v50  ;;  %v1938_v56 = vadd.f32 %v4996_v55, %v1611_v60  ;;  %v4997_v9 = vld [vmem:[#allocation20_spill] sm:$0xff] }
 0x163   : > { %3069 = vst [vmem:[%s4822_s6 + $0x18] sm:$0xff] %v3053_v22  ;;  %v3052_v34 = vadd.f32 %v4806_v62, %v2892_v29  ;;  %v2895_v37 = vadd.f32 %v3868_v59, %v2568_v20  ;;  %v2572_v35 = vadd.f32 %v3846_v58, %v2245_v13  ;;  %v2247_v17 = vadd.f32 %v4997_v9, %v1939_v27  ;;  %v4998_v20 = vld [vmem:[#allocation21_spill] sm:$0xff] }
 0x164   : > { %v2532_v8 = vpop.f32.mrf.mxu1  ;;  %v2839_v11 = vpop.f32.mrf.mxu0  ;;  %v2368_v22 = vadd.f32 %v4998_v20, %v2042_v0  ;;  %v4999_v29 = vld [vmem:[#allocation25_spill] sm:$0xff] }
 0x165   : > { %3068 = vst [vmem:[%s4822_s6 + $0x10] sm:$0xff] %v3052_v34  ;;  %v3055_v41 = vadd.f32 %v4806_v62, %v2895_v37  ;;  %v2894_v18 = vadd.f32 %v2839_v11, %v2567_v26  ;;  %v2692_v33 = vadd.f32 %v4999_v29, %v2365_v52  ;;  %v2571_v42 = vadd.f32 %v2532_v8, %v2244_v51  ;;  %v5000_v26 = vld [vmem:[#allocation22_spill] sm:$0xff]  ;;  %v5001_v37 = vld [vmem:[#allocation23_spill] sm:$0xff] }
 0x166   : > { %v3849_v23 = vpop.f32.mrf.mxu1  ;;  %v3871_v24 = vpop.f32.mrf.mxu0  ;;  %v2246_v34 = vadd.f32 %v5000_v26, %v1938_v56  ;;  %v2367_v60 = vadd.f32 %v5001_v37, %v2041_v4  ;;  %v2695_v40 = vadd.f32 %v4788_v25, %v2368_v22 }
 0x167   : > { %3071 = vst [vmem:[%s4822_s6 + $0x28] sm:$0xff] %v3055_v41  ;;  %v3054_v16 = vadd.f32 %v4806_v62, %v2894_v18  ;;  %v2897_v19 = vadd.f32 %v3871_v24, %v2570_v30  ;;  %v2574_v43 = vadd.f32 %v3849_v23, %v2247_v17 }
 0x168   : > { %v2542_v53 = vpop.f32.mrf.mxu1  ;;  %v2849_v5 = vpop.f32.mrf.mxu0  ;;  %v2694_v38 = vadd.f32 %v4793_v7, %v2367_v60 }
 0x169   : > { %3070 = vst [vmem:[%s4822_s6 + $0x20] sm:$0xff] %v3054_v16  ;;  %v3057_v54 = vadd.f32 %v4806_v62, %v2897_v19  ;;  %v2896_v36 = vadd.f32 %v2849_v5, %v2569_v14  ;;  %v2573_v15 = vadd.f32 %v2542_v53, %v2246_v34 }
 0x16a   : > { %v3874_v39 = vpop.f32.mrf.mxu0  ;;  %v3882_v57 = vpop.f32.mrf.mxu1 }
 0x16b   : > { %3073 = vst [vmem:[%s4822_s6 + $0x38] sm:$0xff] %v3057_v54  ;;  %v3056_v58 = vadd.f32 %v4806_v62, %v2896_v36  ;;  %v2899_v59 = vadd.f32 %v3874_v39, %v2572_v35  ;;  %v3020_v6 = vadd.f32 %v3882_v57, %v2693_v32 }
 0x16c   : > { %v2859_v45 = vpop.f32.mrf.mxu0  ;;  %v2996_v61 = vpop.f32.mrf.mxu1 }
 0x16d   : > { %3072 = vst [vmem:[%s4822_s6 + $0x30] sm:$0xff] %v3056_v58  ;;  %v3059_v1 = vadd.f32 %v4806_v62, %v2899_v59  ;;  %v3063_v46 = vadd.f32 %v4806_v62, %v3020_v6  ;;  %v2898_v8 = vadd.f32 %v2859_v45, %v2571_v42  ;;  %v3019_v11 = vadd.f32 %v2996_v61, %v2692_v33 }
 0x16e   : > { %v3877_v30 = vpop.f32.mrf.mxu0  ;;  %v3885_v41 = vpop.f32.mrf.mxu1 }
 0x16f   : > { %3075 = vst [vmem:[%s4822_s6 + $0x48] sm:$0xff] %v3059_v1  ;;  %3079 = vst [vmem:[%s4822_s6 + $0x68] sm:$0xff] %v3063_v46  ;;  %v3058_v25 = vadd.f32 %v4806_v62, %v2898_v8  ;;  %v3062_v18 = vadd.f32 %v4806_v62, %v3019_v11  ;;  %v2901_v44 = vadd.f32 %v3877_v30, %v2574_v43 }
 0x170   : > { %v3022_v0 = vadd.f32 %v3885_v41, %v2695_v40  ;;  %v2869_v12 = vpop.f32.mrf.mxu0  ;;  %v3006_v7 = vpop.f32.mrf.mxu1 }
 0x171   : > { %3074 = vst [vmem:[%s4822_s6 + $0x40] sm:$0xff] %v3058_v25  ;;  %3078 = vst [vmem:[%s4822_s6 + $0x60] sm:$0xff] %v3062_v18  ;;  %v3061_v48 = vadd.f32 %v4806_v62, %v2901_v44  ;;  %v2900_v47 = vadd.f32 %v2869_v12, %v2573_v15  ;;  %v3021_v2 = vadd.f32 %v3006_v7, %v2694_v38 }
 0x172   : > { %v3065_v63 = vadd.f32 %v4806_v62, %v3022_v0 }
 0x173   : > { %3077 = vst [vmem:[%s4822_s6 + $0x58] sm:$0xff] %v3061_v48  ;;  %v3060_v13 = vadd.f32 %v4806_v62, %v2900_v47  ;;  %v3064_v23 = vadd.f32 %v4806_v62, %v3021_v2 }
 0x174   : > { %3081 = vst [vmem:[%s4822_s6 + $0x78] sm:$0xff] %v3065_v63 }
 0x175   : > { %3076 = vst [vmem:[%s4822_s6 + $0x50] sm:$0xff] %v3060_v13  ;;  %3080 = vst [vmem:[%s4822_s6 + $0x70] sm:$0xff] %v3064_v23 }
 0x176   : > { %3977 = shalt.err (!%p3974_p9)
}
 0x177   : > { %s3978_s24 = scalar_lea.hbm %s4892_s13, 2048  ;;  %s3982_s9 = scalar_lea.hbm %s4959_s4, 8192 }
 0x178   : > { %p3979_p10 = scmp.ne.s32.totalorder %s4892_s13, %s3978_s24  ;;  %p3983_p13 = scmp.lt.s32.totalorder %s4892_s13, %s4959_s4 }
 0x179   : > { %p3984_p0 = scmp.lt.s32.totalorder %s3982_s9, %s3978_s24 }
 0x17a   : > { %p3980_p11 = pnand %p3979_p10, %p4137_p3 }
 0x17b   : > { %p3985_p1 = por %p3984_p0, %p3983_p13 }
 0x17c   : > { %p3981_p12 = pneg %p3980_p11 }
 0x17e   : > { %p3986_p2 = pnand %p3985_p1, %p3981_p12 }
 0x180   : > { %3989 = shalt.err (!%p3986_p2)
}
 0x181   : > { %s4059_s12 = smov 128   ;;  %s4060_s10 = smov 8  }
 0x182   : > { %3891 = dma.vmem_to_hbm [thread:$0]  (%p4137_p3), %s4894_s11, 2048, %s4892_s13, %s4904_s14, %s4059_s12, %s4059_s12, %s4060_s10  }
 0x183 PF: > { %p3897_p4 = scmp.ge.s32.totalorder %s4056_s22, 2  ;;  %s3114_s23 = sand.u32 1, %s4028_s15  }
 0x184   : > { %s3115_s27 = scalar_lea.sflag [#allocation4], %s3114_s23 }
 0x185   : > { %p3894_p5 = pnand %p3897_p4, %p4146_p8 }
 0x187   : > { %p3895_p6 = pneg %p3894_p5 }
 0x189   : > { %4023 = dma.done.wait (%p3895_p6), %s3115_s27, 2048  }
 0x18a   : > { %4025 = vsyncadd (%p3895_p6), %s3115_s27, 4294965248  ;;  %s17_s22 = sadd.s32 1, %s4056_s22   ;;  %s5002_s15 = smov %s4032_s16 }
 0x18b   : > { %p14_p7 = scmp.ge.s32.totalorder %s17_s22, 6   ;;  %s5003_s16 = smov %s4036_s17 }
 0x18c   : > { %s5004_s17 = smov %s4155_s7  ;;  %s5005_s18 = smov %s4048_s20 }
 0x18d   : > { %s5006_s19 = smov %s4052_s21  ;;  %s5007_s20 = smov %s5010_s25 }
 0x18e   : > { %s5008_s21 = smov %s5014_s26  ;;  %16 = sbr.rel (!%p14_p7) target bundleno = 5 (0x5), region = 84 }
 0x193   :  { %3120 = vsyncpa [#allocation4], 1 }
 0x194   :  { %3122 = vsyncpa [#allocation4 + $0x1], 1 }

</bundles_post_ra>
